<compile_context>
chip_gen: v5e
topology: v5e:2x2
jax: 0.10.0
libtpu: 0.0.40
codegen_flags: <defaults>
</compile_context>

<pallas_src>
import math

import jax
import jax.numpy as jnp
from jax.experimental import pallas as pl
from jax.experimental.pallas import tpu as pltpu


_PALLAS_MIN_BYTES = 1 << 20           # below this (or D < 128) plain XLA fusion wins


def _round_up(x: int, m: int) -> int:
    return ((x + m - 1) // m) * m


def _sublane(dtype) -> int:
    # sublane tile: 8 rows for 32-bit, 16 for 16-bit, 32 for 8-bit dtypes
    return 8 * max(1, 4 // jnp.dtype(dtype).itemsize)


def _vmem_params():
    """Generation-aware scoped-VMEM limit and live-block-byte budget.

    v5e/v6e: 128 MiB VMEM per TensorCore -> ~96 MiB limit; v7x: 64 MiB -> ~48 MiB limit."""
    try:
        cap = int(getattr(pltpu.get_tpu_info(), "vmem_capacity_bytes", 64 * 1024 * 1024))
    except Exception:                     # no TPU info -> assume the smallest (v7x-like) VMEM
        cap = 64 * 1024 * 1024
    limit = min((cap * 3) // 4, 96 * 1024 * 1024)
    limit = max(limit, 32 * 1024 * 1024)
    budget = limit // 2                   # target bytes of live (double-buffered) block buffers
    return limit, budget


def _pick_seq_tile(total_rows, per_row_bytes, fixed_bytes, budget_bytes, *, lane_aligned,
                   max_rows=8192):
    """Choose a seq-tile size (rows) from a padding-aware VMEM budget.

    lane_aligned=True -> the tile is the *last* (lane) dim of some block, so it must be a
    multiple of 128 (or the full extent).  Prefers ~8 grid steps (megacore + pipelining) but
    never shrinks a step below ~4 MiB of HBM traffic, where the ~0.35us/step overhead would
    dominate (worst on v7x's ~3.2 TB/s HBM)."""
    align = 128 if lane_aligned else 8
    if total_rows <= align:
        return total_rows                                   # single full block, always legal
    budget_rows = max(align, (budget_bytes - fixed_bytes) // max(1, per_row_bytes))
    step4mb_rows = (4 << 20) // max(1, per_row_bytes)       # rows giving ~4 MiB per step
    steps8_rows = -(-total_rows // 8)                       # rows giving ~8 grid steps
    target_rows = max(align, step4mb_rows, steps8_rows)
    rows = min(budget_rows, target_rows, max_rows, total_rows)
    rows = max(align, (rows // align) * align)
    return rows


def _pos_encoding_table(max_len: int, d_model: int) -> jnp.ndarray:
    """Same math as PositionalEncoding.__init__ (pe buffer squeezed to (max_len, d_model))."""
    position = jnp.arange(0, max_len, dtype=jnp.float32)[:, None]
    div_term = jnp.exp(jnp.arange(0, d_model, 2, dtype=jnp.float32)
                       * (-math.log(10000.0) / d_model))
    angles = position * div_term                                  # (max_len, ceil(d/2))
    pe = jnp.zeros((max_len, d_model), dtype=jnp.float32)
    pe = pe.at[:, 0::2].set(jnp.sin(angles)[:, : (d_model + 1) // 2])
    pe = pe.at[:, 1::2].set(jnp.cos(angles)[:, : d_model // 2])
    return pe


# ---------------------------------------------------------------------------------------------
# Kernel 1: fused  feature_layer(src.reshape.permute).transpose(1,0) + pe[:T]
# ---------------------------------------------------------------------------------------------
def _embed_pe_kernel(x_ref, w_ref, b_ref, pe_ref, o_ref):
    # x_ref : (N, F, TT)  src tile in its *native* (batch, feat, time) layout (no wrapper transpose)
    # w_ref : (D, F)      feature_layer weight in its native torch layout, resident
    # b_ref : (1, D)      bias (f32), resident
    # pe_ref: (TT, D)     positional-encoding rows for this seq tile (f32)
    # o_ref : (TT, N*D)   lane-dense output tile; wrapper views it back as (T, N, D)
    n_batch = x_ref.shape[0]
    w = w_ref[...]                                   # hoisted out of the batch loop
    add = b_ref[...] + pe_ref[...]                   # (TT, D) f32, hoisted
    parts = []
    for n in range(n_batch):                         # static unroll over the (small) batch dim
        # (D, F) @ (F, TT) -> (D, TT): MXU matmul with K = d_feat, f32 accumulation
        z = jnp.dot(w, x_ref[n], preferred_element_type=jnp.float32)
        # well-aligned in-VMEM XLU transpose (D, TT) -> (TT, D); store path untouched
        parts.append(jnp.transpose(z) + add)
    # lane-concat -> (TT, N*D) and a single unmasked full-slab store.
    # (rows past T in the last partial seq tile compute garbage but are masked on writeback.)
    o_ref[...] = jnp.concatenate(parts, axis=-1).astype(o_ref.dtype)


def feature_embed_positional_encode(src, weight, bias, pe_full, *, d_feat):
    """Fused Transformer.forward prologue:
         src.reshape(N, d_feat, -1).permute(0, 2, 1) -> feature_layer -> .transpose(1, 0) -> + pe[:T]
       Returns the positional-encoded encoder input of shape (T, N, d_model)."""
    N = src.shape[0]
    F = d_feat
    x = src.reshape(N, F, -1)                        # (N, F, T): free row-major reshape, no HBM pass
    T = x.shape[-1]
    D = weight.shape[0]                              # torch Linear weight is (d_model, d_feat)

    if D < 128 or T * N * D * x.dtype.itemsize < _PALLAS_MIN_BYTES:
        # Tiny / lane-padded problems (e.g. the module default d_model=8): XLA fusion wins.
        y = jnp.einsum("nft,df->tnd", x.astype(jnp.float32), weight.astype(jnp.float32))
        y = y + bias.astype(jnp.float32) + pe_full[:T].astype(jnp.float32)[:, None, :]
        return y.astype(src.dtype)

    b2 = bias.reshape(1, D).astype(jnp.float32)
    pe = pe_full[:T].astype(jnp.float32)             # (T, D)

    isz = x.dtype.itemsize
    sub = _sublane(x.dtype)
    nd_pad = _round_up(N * D, 128)
    d_pad = _round_up(D, 128)
    # padding-aware live bytes per seq row: 2x x-block, 2x out-block, 2x pe-block,
    # plus ~2x out-block worth of f32 intermediates (per-batch matmul results / concat)
    per_row = (2 * N * _round_up(F, sub) * isz + 2 * nd_pad * isz
               + 2 * d_pad * 4 + 2 * nd_pad * 4)
    fixed = (2 * _round_up(D, 8) * _round_up(F, 128) * weight.dtype.itemsize   # resident weight
             + 2 * d_pad * 4)                                                  # resident bias

    limit, budget = _vmem_params()
    TT = _pick_seq_tile(T, per_row, fixed, budget, lane_aligned=True)

    out = pl.pallas_call(
        _embed_pe_kernel,
        out_shape=jax.ShapeDtypeStruct((T, N * D), x.dtype),
        grid=(pl.cdiv(T, TT),),
        in_specs=[
            pl.BlockSpec((N, F, TT), lambda i: (0, 0, i)),   # src tile, native layout
            pl.BlockSpec((D, F),     lambda i: (0, 0)),      # weight, resident
            pl.BlockSpec((1, D),     lambda i: (0, 0)),      # bias, resident
            pl.BlockSpec((TT, D),    lambda i: (i, 0)),      # pe rows
        ],
        out_specs=pl.BlockSpec((TT, N * D), lambda i: (i, 0)),
        compiler_params=pltpu.CompilerParams(
            dimension_semantics=("parallel",),
            vmem_limit_bytes=limit,
        ),
    )(x, weight, b2, pe)
    return out.reshape(T, N, D)                       # free view back to (T, N, D)


# ---------------------------------------------------------------------------------------------
# Kernel 2: standalone PositionalEncoding.forward   x (S, B, D) -> x + pe[:S] (broadcast over B)
# ---------------------------------------------------------------------------------------------
def _add_pe_kernel(x_ref, pe_ref, o_ref):
    # x_ref/o_ref: (TS, B*D) lane-dense rows; pe_ref: (TS, D) broadcast over batch *in VMEM*
    b = x_ref.shape[1] // pe_ref.shape[1]
    pe_row = pe_ref[...] if b == 1 else jnp.tile(pe_ref[...], (1, b))
    o_ref[...] = (x_ref[...] + pe_row).astype(o_ref.dtype)


def positional_encoding_forward(x, pe_full):
    """Standalone PositionalEncoding.forward for sequence-first x: (S, B, D) -> x + pe[:S]."""
    S, B, D = x.shape
    if D < 128 or S * B * D * x.dtype.itemsize < _PALLAS_MIN_BYTES:
        return (x.astype(jnp.float32)
                + pe_full[:S].astype(jnp.float32)[:, None, :]).astype(x.dtype)

    x2 = x.reshape(S, B * D)                          # free reshape -> lane-dense 2-D view
    pe = pe_full[:S].astype(jnp.float32)              # (S, D); no HBM-materialized batch tiling

    isz = x.dtype.itemsize
    bd_pad = _round_up(B * D, 128)
    d_pad = _round_up(D, 128)
    per_row = 4 * bd_pad * isz + 2 * d_pad * 4 + bd_pad * 4   # x+out blocks (x2 buf), pe, f32 temp
    limit, budget = _vmem_params()
    TS = _pick_seq_tile(S, per_row, 0, budget, lane_aligned=False)

    out = pl.pallas_call(
        _add_pe_kernel,
        out_shape=jax.ShapeDtypeStruct((S, B * D), x.dtype),
        grid=(pl.cdiv(S, TS),),
        in_specs=[pl.BlockSpec((TS, B * D), lambda i: (i, 0)),
                  pl.BlockSpec((TS, D),     lambda i: (i, 0))],
        out_specs=pl.BlockSpec((TS, B * D), lambda i: (i, 0)),
        compiler_params=pltpu.CompilerParams(
            dimension_semantics=("parallel",),
            vmem_limit_bytes=limit,
        ),
    )(x2, pe)
    return out.reshape(S, B, D)


if __name__ == "__main__":
    keys = jax.random.split(jax.random.PRNGKey(0), 8)
    d_feat = 6

    # --- 1) Transformer.forward prologue, module-default tiny config (d_feat=6, d_model=8) ----
    #        -> XLA-bypass path (at D=8 a Pallas kernel would waste >90% of every vreg/store)
    N0, T0, D0 = 2, 16, 8
    src0 = jax.random.normal(keys[0], (N0, d_feat * T0), jnp.float32)
    w0 = jax.random.normal(keys[1], (D0, d_feat), jnp.float32) * 0.5
    b0 = jax.random.normal(keys[2], (D0,), jnp.float32) * 0.5
    pe0 = _pos_encoding_table(1000, D0)                       # PositionalEncoding(max_len=1000)
    out0 = jax.block_until_ready(
        feature_embed_positional_encode(src0, w0, b0, pe0, d_feat=d_feat))
    xr0 = jnp.transpose(src0.reshape(N0, d_feat, T0), (0, 2, 1))
    ref0 = jnp.transpose(jnp.einsum("ntf,df->ntd", xr0, w0) + b0, (1, 0, 2)) \
        + pe0[:T0][:, None, :]
    assert out0.shape == (T0, N0, D0) and out0.dtype == src0.dtype
    assert jnp.allclose(out0, ref0, atol=1e-4, rtol=1e-4), "prologue (XLA path) mismatch"

    # --- 2) same prologue at a Pallas-sized config (D >= 128, ~1.5 MiB of activations) --------
    N1, T1, D1 = 4, 768, 128
    src1 = jax.random.normal(keys[3], (N1, d_feat * T1), jnp.float32)
    w1 = jax.random.normal(keys[4], (D1, d_feat), jnp.float32) * 0.5
    b1 = jax.random.normal(keys[5], (D1,), jnp.float32) * 0.5
    pe1 = _pos_encoding_table(1000, D1)
    out1 = jax.block_until_ready(
        feature_embed_positional_encode(src1, w1, b1, pe1, d_feat=d_feat))
    xr1 = jnp.transpose(src1.reshape(N1, d_feat, T1), (0, 2, 1))
    ref1 = jnp.transpose(jnp.einsum("ntf,df->ntd", xr1, w1) + b1, (1, 0, 2)) \
        + pe1[:T1][:, None, :]
    assert out1.shape == (T1, N1, D1) and out1.dtype == src1.dtype
    assert jnp.allclose(out1, ref1, atol=2e-2, rtol=2e-2), "fused Pallas kernel mismatch"

    # --- 3) standalone PositionalEncoding.forward, Pallas path --------------------------------
    S2, B2, D2 = 512, 4, 256
    x2 = jax.random.normal(keys[6], (S2, B2, D2), jnp.float32)
    pe2 = _pos_encoding_table(512, D2)
    out2 = jax.block_until_ready(positional_encoding_forward(x2, pe2))
    assert out2.shape == x2.shape and out2.dtype == x2.dtype
    assert jnp.allclose(out2, x2 + pe2[:S2][:, None, :], atol=1e-5), "PE Pallas kernel mismatch"

    # --- 4) standalone PositionalEncoding.forward, tiny config -> XLA bypass ------------------
    S3, B3, D3 = 8, 2, 32
    x3 = jax.random.normal(keys[7], (S3, B3, D3), jnp.float32)
    pe3 = _pos_encoding_table(64, D3)
    out3 = jax.block_until_ready(positional_encoding_forward(x3, pe3))
    assert jnp.allclose(out3, x3 + pe3[:S3][:, None, :], atol=1e-6), "PE (XLA path) mismatch"

    print("KERNEL_OK")
</pallas_src>

<mosaic_0001>
module attributes {stable_mosaic.version = 11 : i64} {
  func.func @_embed_pe_kernel(%arg0: i32, %arg1: memref<4x6x384xf32, #tpu.memory_space<vmem>>, %arg2: memref<128x6xf32, #tpu.memory_space<vmem>>, %arg3: memref<1x128xf32, #tpu.memory_space<vmem>>, %arg4: memref<384x128xf32, #tpu.memory_space<vmem>>, %arg5: memref<384x512xf32, #tpu.memory_space<vmem>>) attributes {dimension_semantics = [#tpu.dimension_semantics<parallel>], iteration_bounds = array<i64: 2>, scalar_prefetch = 0 : i64, scratch_operands = 0 : i64, tpu.core_type = #tpu.core_type<tc>, window_params = [{transform_indices = @transform_0, window_bounds = array<i64: 4, 6, 384>}, {pipeline_mode = #tpu.pipeline_mode<synchronous>, transform_indices = @transform_1, window_bounds = array<i64: 128, 6>}, {pipeline_mode = #tpu.pipeline_mode<synchronous>, transform_indices = @transform_2, window_bounds = array<i64: 1, 128>}, {transform_indices = @transform_3, window_bounds = array<i64: 384, 128>}, {transform_indices = @transform_4, window_bounds = array<i64: 384, 512>}]} {
    %c0 = arith.constant 0 : index
    %c0_0 = arith.constant 0 : index
    %0 = vector.load %arg2[%c0, %c0_0] : memref<128x6xf32, #tpu.memory_space<vmem>>, vector<128x6xf32>
    %c0_1 = arith.constant 0 : index
    %c0_2 = arith.constant 0 : index
    %1 = vector.load %arg3[%c0_1, %c0_2] : memref<1x128xf32, #tpu.memory_space<vmem>>, vector<1x128xf32>
    %c0_3 = arith.constant 0 : index
    %c0_4 = arith.constant 0 : index
    %2 = vector.load %arg4[%c0_3, %c0_4] : memref<384x128xf32, #tpu.memory_space<vmem>>, vector<384x128xf32>
    %3 = vector.broadcast %1 : vector<1x128xf32> to vector<384x128xf32>
    %4 = arith.addf %3, %2 : vector<384x128xf32>
    %c0_5 = arith.constant 0 : index
    %c0_6 = arith.constant 0 : index
    %c0_7 = arith.constant 0 : index
    %5 = vector.load %arg1[%c0_5, %c0_6, %c0_7] : memref<4x6x384xf32, #tpu.memory_space<vmem>>, vector<1x6x384xf32>
    %6 = vector.shape_cast %5 : vector<1x6x384xf32> to vector<6x384xf32>
    %cst = arith.constant dense<0.000000e+00> : vector<128x384xf32>
    %7 = tpu.matmul %0, %6, %cst {dimension_numbers = #tpu.dot_dimension_numbers<[1], [0], [0], [1], [0, 0, 1, 1], [], []>} : vector<128x6xf32>, vector<6x384xf32>, vector<128x384xf32> -> vector<128x384xf32>
    %8 = tpu.transpose %7, [1, 0] : vector<128x384xf32> -> vector<384x128xf32>
    %9 = arith.addf %8, %4 : vector<384x128xf32>
    %c1 = arith.constant 1 : index
    %c0_8 = arith.constant 0 : index
    %c0_9 = arith.constant 0 : index
    %10 = vector.load %arg1[%c1, %c0_8, %c0_9] : memref<4x6x384xf32, #tpu.memory_space<vmem>>, vector<1x6x384xf32>
    %11 = vector.shape_cast %10 : vector<1x6x384xf32> to vector<6x384xf32>
    %cst_10 = arith.constant dense<0.000000e+00> : vector<128x384xf32>
    %12 = tpu.matmul %0, %11, %cst_10 {dimension_numbers = #tpu.dot_dimension_numbers<[1], [0], [0], [1], [0, 0, 1, 1], [], []>} : vector<128x6xf32>, vector<6x384xf32>, vector<128x384xf32> -> vector<128x384xf32>
    %13 = tpu.transpose %12, [1, 0] : vector<128x384xf32> -> vector<384x128xf32>
    %14 = arith.addf %13, %4 : vector<384x128xf32>
    %c2 = arith.constant 2 : index
    %c0_11 = arith.constant 0 : index
    %c0_12 = arith.constant 0 : index
    %15 = vector.load %arg1[%c2, %c0_11, %c0_12] : memref<4x6x384xf32, #tpu.memory_space<vmem>>, vector<1x6x384xf32>
    %16 = vector.shape_cast %15 : vector<1x6x384xf32> to vector<6x384xf32>
    %cst_13 = arith.constant dense<0.000000e+00> : vector<128x384xf32>
    %17 = tpu.matmul %0, %16, %cst_13 {dimension_numbers = #tpu.dot_dimension_numbers<[1], [0], [0], [1], [0, 0, 1, 1], [], []>} : vector<128x6xf32>, vector<6x384xf32>, vector<128x384xf32> -> vector<128x384xf32>
    %18 = tpu.transpose %17, [1, 0] : vector<128x384xf32> -> vector<384x128xf32>
    %19 = arith.addf %18, %4 : vector<384x128xf32>
    %c3 = arith.constant 3 : index
    %c0_14 = arith.constant 0 : index
    %c0_15 = arith.constant 0 : index
    %20 = vector.load %arg1[%c3, %c0_14, %c0_15] : memref<4x6x384xf32, #tpu.memory_space<vmem>>, vector<1x6x384xf32>
    %21 = vector.shape_cast %20 : vector<1x6x384xf32> to vector<6x384xf32>
    %cst_16 = arith.constant dense<0.000000e+00> : vector<128x384xf32>
    %22 = tpu.matmul %0, %21, %cst_16 {dimension_numbers = #tpu.dot_dimension_numbers<[1], [0], [0], [1], [0, 0, 1, 1], [], []>} : vector<128x6xf32>, vector<6x384xf32>, vector<128x384xf32> -> vector<128x384xf32>
    %23 = tpu.transpose %22, [1, 0] : vector<128x384xf32> -> vector<384x128xf32>
    %24 = arith.addf %23, %4 : vector<384x128xf32>
    %25 = tpu.concatenate %9, %14, %19, %24 in 1 : vector<384x128xf32>, vector<384x128xf32>, vector<384x128xf32>, vector<384x128xf32> -> vector<384x512xf32>
    %c0_17 = arith.constant 0 : index
    %c0_18 = arith.constant 0 : index
    %26 = vector.load %arg5[%c0_17, %c0_18] : memref<384x512xf32, #tpu.memory_space<vmem>>, vector<384x512xf32>
    tpu.vector_store %arg5[%c0_17, %c0_18], %25 {strides = array<i32>} : memref<384x512xf32, #tpu.memory_space<vmem>>, vector<384x512xf32>,
    return
  }
  func.func @transform_0(%arg0: i32) -> (i32, i32, i32) {
    %c0_i32 = arith.constant 0 : i32
    %c0_i32_0 = arith.constant 0 : i32
    %c0_i32_1 = arith.constant 0 : i32
    return %c0_i32, %c0_i32_0, %arg0 : i32, i32, i32
  }
  func.func @transform_1(%arg0: i32) -> (i32, i32) {
    %c0_i32 = arith.constant 0 : i32
    %c0_i32_0 = arith.constant 0 : i32
    %c0_i32_1 = arith.constant 0 : i32
    return %c0_i32, %c0_i32_0 : i32, i32
  }
  func.func @transform_2(%arg0: i32) -> (i32, i32) {
    %c0_i32 = arith.constant 0 : i32
    %c0_i32_0 = arith.constant 0 : i32
    %c0_i32_1 = arith.constant 0 : i32
    return %c0_i32, %c0_i32_0 : i32, i32
  }
  func.func @transform_3(%arg0: i32) -> (i32, i32) {
    %c0_i32 = arith.constant 0 : i32
    %c0_i32_0 = arith.constant 0 : i32
    return %arg0, %c0_i32 : i32, i32
  }
  func.func @transform_4(%arg0: i32) -> (i32, i32) {
    %c0_i32 = arith.constant 0 : i32
    %c0_i32_0 = arith.constant 0 : i32
    return %arg0, %c0_i32 : i32, i32
  }
}

</mosaic_0001>

<bundles_post_ra>
// kernel: tpu_custom_call.1
= control target key start
LH: loop header
LB: loop body
LE: loop exit
PB: predicated region body
PF: predicated region fallthrough
CT: control target
= control target key end

     0   :  { %s3995_s0 = inlined_call_operand.vmem [shape: f32[4,6,768], index: 0, kind: input, shape index: {}]   ;;  %s3996_s1 = inlined_call_operand.vmem [shape: f32[128,6], index: 1, kind: input, shape index: {}]   ;;  %s3997_s2 = inlined_call_operand.hbm [shape: f32[1,128], index: 2, kind: input, shape index: {}]   ;;  %s3998_s3 = inlined_call_operand.hbm [shape: f32[768,128], index: 3, kind: input, shape index: {}]   ;;  %s3999_s4 = inlined_call_operand.hbm [shape: f32[768,512], index: 4, kind: output, shape index: {}]  }
   0x1   :  { %4018 = sst [smem:[#allocation21_spill]] %s3995_s0 }
   0x2   :  { %4019 = sst [smem:[#allocation22_spill]] %s3997_s2 }
   0x3   :  { %9 = vsyncpa [#allocation4], 0 }
   0x4   :  { %10 = vsyncpa [#allocation7], 0 }
   0x5   :  { %12 = vsyncpa [#allocation7 + $0x1], 0 }
   0x6   :  { %13 = vsyncpa [#allocation5], 0 }
   0x7   :  { %15 = vsyncpa [#allocation5 + $0x1], 0  ;;  %s2649_s15 = smov 0   ;;  %s2651_s16 = smov 0  }
   0x8   :  { %s2653_s17 = smov 0   ;;  %s2655_s18 = smov 0  }
   0x9 LB: > { %s2670_s19 = sadd.s32 4294967295, %s2617_s18   ;;  %s2183_s20 = sadd.s32 4294967294, %s2617_s18   ;;  %s2617_s18 = sphi %s2655_s18, %s4051_s18   ;;  %s2613_s17 = sphi %s2653_s17, %s4050_s17   ;;  %s2609_s16 = sphi %s2651_s16, %s4049_s16   ;;  %s2605_s15 = sphi %s2649_s15, %s4048_s15  }
   0xa   : > { %s2674_s21 = sadd.s32 1, %s2617_s18   ;;  %s28_s22 = sadd.s32 1, %s2613_s17 }
   0xb   : > { %s25_s23 = ssub.s32 %s2617_s18, %s2674_s21  ;;  %p35_p0 = scmp.ne.s32.totalorder %s2613_s17, %s2609_s16 }
   0xc   : > { %p26_p1 = scmp.eq.s32.totalorder %s25_s23, 0  ;;  %p36_p2 = scmp.eq.s32.totalorder %s2617_s18, 0 }
   0xd   : > { %p109_p3 = scmp.ne.s32.totalorder %s2609_s16, %s2605_s15  ;;  %p110_p4 = scmp.eq.s32.totalorder %s2670_s19, 0 }
   0xe   : > { %s2686_s24 = scalar_select %p26_p1, %s2613_s17, %s28_s22  }
   0xf   : > { %p2688_p5 = por %p36_p2, %p35_p0  ;;  %p2694_p6 = por %p110_p4, %p109_p3 }
  0x10   : > { %p133_p7 = scmp.eq.s32.totalorder %s2670_s19, 1  ;;  %p139_p8 = scmp.eq.s32.totalorder %s2183_s20, 1 }
  0x11   : > { %p2184_p9 = scmp.ge.s32.totalorder %s2617_s18, 1  ;;  %p146_p10 = scmp.lt.s32.totalorder %s2617_s18, 3 }
  0x12   : > { %p2701_p11 = por %p133_p7, %p35_p0  ;;  %p2705_p12 = por %p139_p8, %p109_p3 }
  0x13   : > { %p2709_p13 = pnand %p2184_p9, %p146_p10  ;;  %s4025_s2 = sld [smem:[#allocation22_spill]] }
  0x14   : > { %s2619_s7 = smov [#allocation3]   ;;  %p2186_p2 = scmp.ge.s32.totalorder %s2617_s18, 2 }
  0x15   : > { %p2426_p1 = pneg %p2709_p13  ;;  %s163_s8 = sshll.u32 %s2619_s7, 4  ;;  %s164_s8 = int_to_ptr.vmem [resolvable:$true] %s163_s8 }
  0x16   : > { %170 = sbr.rel (%p2186_p2) target bundleno = 65 (0x41), region = 24 }
  0x17   : > { %p2427_p0 = pnand %p2426_p1, %p110_p4 }
  0x19   : > { %s161_s6 = sshll.u32 %s4025_s2, 4  ;;  %s162_s6 = int_to_ptr.hbm [resolvable:$true] %s161_s6 }
  0x1a   : > { %2429 = dma.hbm_to_vmem [thread:$0]  (!%p2427_p0), %s162_s6, 16, %s164_s8, [#allocation4]  }
  0x1b   : > { %173 = sbr.rel (!%p2688_p5) target bundleno = 48 (0x30), region = 28  ;;  %s175_s9 = sand.u32 (%p2688_p5), 1, %s2613_s17  }
  0x1c   : > { %s2408_s10 = smul.u32 (%p2688_p5), 24, %s2617_s18  ;;  %s4026_s0 = sld [smem:[#allocation21_spill]] (%p2688_p5) }
  0x1d   : > { %s2413_s11 = smul.u32 (%p2688_p5), 96, %s175_s9 }
  0x1f   : > { %s177_s20 = scalar_lea.vmem (%p2688_p5), [#allocation2], %s2413_s11 }
  0x22   : > { %s180_s14 = scalar_lea.vmem %s4026_s0, %s2408_s10 }
  0x23   : > { %v193_v0 = vld [vmem:[%s180_s14] sm:$0xff]  ;;  %v195_v1 = vld [vmem:[%s180_s14 + $0x8] sm:$0xff]  ;;  %v197_v2 = vld [vmem:[%s180_s14 + $0x10] sm:$0xff] }
  0x24   : > { %194 = vst [vmem:[%s177_s20] sm:$0xff] %v193_v0  ;;  %v199_v3 = vld [vmem:[%s180_s14 + $0x30] sm:$0xff]  ;;  %v201_v4 = vld [vmem:[%s180_s14 + $0x38] sm:$0xff]  ;;  %v203_v5 = vld [vmem:[%s180_s14 + $0x40] sm:$0xff] }
  0x25   : > { %196 = vst [vmem:[%s177_s20 + $0x8] sm:$0xff] %v195_v1  ;;  %v205_v6 = vld [vmem:[%s180_s14 + $0x60] sm:$0xff]  ;;  %v207_v7 = vld [vmem:[%s180_s14 + $0x68] sm:$0xff]  ;;  %v209_v8 = vld [vmem:[%s180_s14 + $0x70] sm:$0xff] }
  0x26   : > { %198 = vst [vmem:[%s177_s20 + $0x10] sm:$0xff] %v197_v2  ;;  %v211_v9 = vld [vmem:[%s180_s14 + $0x90] sm:$0xff]  ;;  %v213_v10 = vld [vmem:[%s180_s14 + $0x98] sm:$0xff]  ;;  %v215_v11 = vld [vmem:[%s180_s14 + $0xa0] sm:$0xff] }
  0x27   : > { %200 = vst [vmem:[%s177_s20 + $0x18] sm:$0xff] %v199_v3 }
  0x28   : > { %202 = vst [vmem:[%s177_s20 + $0x20] sm:$0xff] %v201_v4 }
  0x29   : > { %204 = vst [vmem:[%s177_s20 + $0x28] sm:$0xff] %v203_v5 }
  0x2a   : > { %206 = vst [vmem:[%s177_s20 + $0x30] sm:$0xff] %v205_v6 }
  0x2b   : > { %208 = vst [vmem:[%s177_s20 + $0x38] sm:$0xff] %v207_v7 }
  0x2c   : > { %210 = vst [vmem:[%s177_s20 + $0x40] sm:$0xff] %v209_v8 }
  0x2d   : > { %212 = vst [vmem:[%s177_s20 + $0x48] sm:$0xff] %v211_v9 }
  0x2e   : > { %214 = vst [vmem:[%s177_s20 + $0x50] sm:$0xff] %v213_v10 }
  0x2f   : > { %216 = vst [vmem:[%s177_s20 + $0x58] sm:$0xff] %v215_v11 }
  0x30 PF: > { %s223_s22 = sand.u32 1, %s2613_s17   ;;  %s2409_s23 = smul.u32 384, %s2617_s18 }
  0x31   : > { %s2414_s30 = smul.u32 384, %s223_s22  ;;  %s224_s11 = scalar_lea.sflag [#allocation7], %s223_s22 }
  0x32   : > { %s232_s7 = scalar_lea.hbm %s3998_s3, %s2409_s23  ;;  %s2525_s0 = scalar_lea.hbm %s3998_s3, 768 }
  0x33   : > { %s233_s8 = sshll.u32 %s232_s7, 4  ;;  %s227_s9 = scalar_lea.vmem [#allocation6], %s2414_s30  ;;  %s234_s8 = int_to_ptr.hbm [resolvable:$true] %s233_s8 }
  0x34   : > { %s235_s10 = sshll.u32 %s227_s9, 4  ;;  %s2519_s12 = sshra.s32 %s234_s8, 4  ;;  %s236_s10 = int_to_ptr.vmem [resolvable:$true] %s235_s10  ;;  %s2520_s12 = int_to_ptr.hbm [resolvable:$true] %s2519_s12 }
  0x35   : > { %s2521_s13 = scalar_lea.hbm %s2520_s12, 384  ;;  %p2526_p9 = scmp.lt.s32.totalorder %s2520_s12, %s3998_s3 }
  0x36   : > { %p2522_p3 = scmp.ne.s32.totalorder %s2520_s12, %s2521_s13  ;;  %p2527_p10 = scmp.lt.s32.totalorder %s2525_s0, %s2521_s13 }
  0x38   : > { %p2523_p7 = pnand %p2522_p3, %p2688_p5  ;;  %p2528_p1 = por %p2527_p10, %p2526_p9 }
  0x3a   : > { %p2524_p8 = pneg %p2523_p7 }
  0x3c   : > { %p2529_p0 = pnand %p2528_p1, %p2524_p8 }
  0x3e   : > { %2532 = shalt.err (!%p2529_p0)
}
  0x3f   : > { %s2620_s22 = smov 128   ;;  %s2621_s23 = smov 8  }
  0x40   : > { %2420 = dma.hbm_to_vmem [thread:$0]  (%p2688_p5), %s234_s8, 6144, %s236_s10, %s224_s11, %s2620_s22, %s2620_s22, %s2621_s23  }
  0x41 PF: > { %247 = sbr.rel (%p2709_p13) target bundleno = 883 (0x373), region = 55 }
  0x46   : > { %s2748_s30 = sand.u32 1, %s2609_s16  }
  0x47   : > { %s2415_s2 = smul.u32 96, %s2748_s30 }
  0x49   : > { %s2751_s6 = scalar_lea.vmem [#allocation2], %s2415_s2 }
  0x4a   : > { %2592 = dma.done.wait (%p110_p4), [#allocation4], 16  }
  0x4b   : > { %2594 = vsyncadd (%p110_p4), [#allocation4], 4294967280  ;;  %s2416_s0 = smul.u32 384, %s2748_s30  ;;  %s262_s25 = scalar_lea.sflag [#allocation7], %s2748_s30 }
  0x4d   : > { %s2759_s29 = scalar_lea.vmem [#allocation6], %s2416_s0 }
  0x4e   : > { %2596 = dma.done.wait (%p2694_p6), %s262_s25, 6144  }
  0x4f   : > { %2598 = vsyncadd (%p2694_p6), %s262_s25, 4294961152  ;;  %vm466_vm0 = vcmask 1045504   ;;  %vm417_vm1 = vcmask 48128   ;;  %v414_v12 = vld [vmem:[%s2751_s6] sm:$0x3f]  ;;  %v2789_v18 = vld [vmem:[%s3996_s1 + $0x8] sm:$0xff] }
  0x50   : > { %v415_v13 = vld [vmem:[%s2751_s6 + $0x8] sm:$0x3f]  ;;  %v2770_v14 = vld [vmem:[%s3996_s1] sm:$0xff]  ;;  %2191 = vmatpush.msk.msra.mxu0 %vm466_vm0, %v414_v12  ;;  %v416_v16 = vld [vmem:[%s2751_s6 + $0x10] sm:$0x3f]  ;;  %s2412_s23 = smul.u32 1536, %s2670_s19 }
  0x51   : > { %2208 = vmatpush.msk.msra.mxu1 %vm466_vm0, %v415_v13  ;;  %v2243_v15 = vld [vmem:[%s2751_s6 + $0x20] sm:$0x3f]  ;;  %2192 = vmatmul.msk.f32.vlgmr.msra.gmra.mxu0 %vm417_vm1, %v2770_v14  ;;  %v2244_v17 = vld [vmem:[%s2751_s6 + $0x28] sm:$0x3f]  ;;  %v2800_v19 = vld [vmem:[%s3996_s1 + $0x10] sm:$0xff]  ;;  %s2064_s8 = scalar_lea.sflag [#allocation5], %s2748_s30 }
  0x52   : > { %2209 = vmatmul.msk.f32.vlgmr.msra.gmra.mxu1 %vm417_vm1, %v2770_v14  ;;  %2262 = vmatpush.msk.msrb.mxu0 %vm466_vm0, %v2243_v15  ;;  %v2811_v20 = vld [vmem:[%s3996_s1 + $0x18] sm:$0xff]  ;;  %v2822_v21 = vld [vmem:[%s3996_s1 + $0x20] sm:$0xff]  ;;  %v2833_v22 = vld [vmem:[%s3996_s1 + $0x28] sm:$0xff]  ;;  %s2076_s25 = scalar_lea.hbm %s3999_s4, %s2412_s23  ;;  %s2567_s11 = scalar_lea.hbm %s3999_s4, 3072 }
  0x53   : > { %2225 = vmatpush.msk.msra.mxu2 %vm466_vm0, %v416_v16  ;;  %2279 = vmatpush.msk.msrb.mxu1 %vm466_vm0, %v2244_v17  ;;  %v2844_v23 = vld [vmem:[%s3996_s1 + $0x30] sm:$0xff]  ;;  %v2855_v24 = vld [vmem:[%s3996_s1 + $0x38] sm:$0xff]  ;;  %v2866_v25 = vld [vmem:[%s3996_s1 + $0x40] sm:$0xff]  ;;  %s2079_s19 = sshll.u32 %s2076_s25, 4  ;;  %s2080_s19 = int_to_ptr.hbm [resolvable:$true] %s2079_s19 }
  0x54   : > { %2226 = vmatmul.msk.f32.vlgmr.msra.gmra.mxu2 %vm417_vm1, %v2770_v14  ;;  %v2877_v26 = vld [vmem:[%s3996_s1 + $0x48] sm:$0xff]  ;;  %v2888_v27 = vld [vmem:[%s3996_s1 + $0x50] sm:$0xff]  ;;  %v2899_v28 = vld [vmem:[%s3996_s1 + $0x58] sm:$0xff]  ;;  %s2561_s26 = sshra.s32 %s2080_s19, 4  ;;  %s2562_s26 = int_to_ptr.hbm [resolvable:$true] %s2561_s26 }
  0x55   : > { %v2242_v29 = vld [vmem:[%s2751_s6 + $0x18] sm:$0x3f]  ;;  %v2296_v30 = vld [vmem:[%s2751_s6 + $0x30] sm:$0x3f]  ;;  %v2918_v32 = vld [vmem:[%s3996_s1 + $0x60] sm:$0xff]  ;;  %s2563_s9 = scalar_lea.hbm %s2562_s26, 1536  ;;  %p2568_p13 = scmp.lt.s32.totalorder %s2562_s26, %s3999_s4 }
  0x56   : > { %v2297_v31 = vld [vmem:[%s2751_s6 + $0x38] sm:$0x3f]  ;;  %2245 = vmatpush.msk.msra.mxu3 %vm466_vm0, %v2242_v29  ;;  %2299 = vmatpush.msk.msrb.mxu2 %vm466_vm0, %v2296_v30  ;;  %v2931_v33 = vld [vmem:[%s3996_s1 + $0x68] sm:$0xff]  ;;  %v2298_v34 = vld [vmem:[%s2751_s6 + $0x40] sm:$0x3f]  ;;  %p2564_p4 = scmp.ne.s32.totalorder %s2562_s26, %s2563_s9  ;;  %p2569_p3 = scmp.lt.s32.totalorder %s2567_s11, %s2563_s9 }
  0x57   : > { %2246 = vmatmul.msk.f32.vlgmr.msra.gmra.mxu3 %vm417_vm1, %v2770_v14  ;;  %2333 = vmatpush.msk.msra.mxu0 %vm466_vm0, %v2298_v34  ;;  %v2946_v35 = vld [vmem:[%s3996_s1 + $0x70] sm:$0xff]  ;;  %v2959_v36 = vld [vmem:[%s3996_s1 + $0x78] sm:$0xff]  ;;  %v2350_v13 = vld [vmem:[%s2751_s6 + $0x48] sm:$0x3f] }
  0x58   : > { %2316 = vmatpush.msk.msrb.mxu3 %vm466_vm0, %v2297_v31  ;;  %v2351_v8 = vld [vmem:[%s2751_s6 + $0x50] sm:$0x3f]  ;;  %2353 = vmatpush.msk.msra.mxu1 %vm466_vm0, %v2350_v13  ;;  %v2352_v17 = vld [vmem:[%s2751_s6 + $0x58] sm:$0x3f]  ;;  %s2417_s6 = smul.u32 1536, %s2748_s30  ;;  %p2565_p5 = pnand %p2564_p4, %p2701_p11 }
  0x59   : > { %2193 = vmatmul.msk.f32.gmra.mxu0 %vm417_vm1, %v2789_v18  ;;  %2370 = vmatpush.msk.msra.mxu2 %vm466_vm0, %v2351_v8  ;;  %v316_v8 = vld [vmem:[%s2759_s29 + $0x8] sm:$0xff]  ;;  %p2570_p7 = por %p2569_p3, %p2568_p13 }
  0x5a   : > { %2210 = vmatmul.msk.f32.gmra.mxu1 %vm417_vm1, %v2789_v18  ;;  %2387 = vmatpush.msk.msra.mxu3 %vm466_vm0, %v2352_v17  ;;  %s3166_s7 = scalar_lea.vmem [#allocation8], %s2417_s6  ;;  %p2566_p6 = pneg %p2565_p5 }
  0x5b   : > { %s2077_s6 = sshll.u32 %s3166_s7, 4  ;;  %s2078_s6 = int_to_ptr.vmem [resolvable:$true] %s2077_s6 }
  0x5c   : > { %2227 = vmatmul.msk.f32.gmra.mxu2 %vm417_vm1, %v2789_v18  ;;  %p2571_p8 = pnand %p2570_p7, %p2566_p6 }
  0x5f   : > { %2247 = vmatmul.msk.f32.gmra.mxu3 %vm417_vm1, %v2789_v18 }
  0x61   : > { %2194 = vmatmul.msk.f32.gmra.mxu0 %vm417_vm1, %v2800_v19 }
  0x62   : > { %2211 = vmatmul.msk.f32.gmra.mxu1 %vm417_vm1, %v2800_v19 }
  0x64   : > { %2228 = vmatmul.msk.f32.gmra.mxu2 %vm417_vm1, %v2800_v19 }
  0x67   : > { %2248 = vmatmul.msk.f32.gmra.mxu3 %vm417_vm1, %v2800_v19 }
  0x69   : > { %2195 = vmatmul.msk.f32.gmra.mxu0 %vm417_vm1, %v2811_v20 }
  0x6a   : > { %2212 = vmatmul.msk.f32.gmra.mxu1 %vm417_vm1, %v2811_v20 }
  0x6c   : > { %2229 = vmatmul.msk.f32.gmra.mxu2 %vm417_vm1, %v2811_v20 }
  0x6f   : > { %2249 = vmatmul.msk.f32.gmra.mxu3 %vm417_vm1, %v2811_v20 }
  0x71   : > { %2196 = vmatmul.msk.f32.gmra.mxu0 %vm417_vm1, %v2822_v21 }
  0x72   : > { %2213 = vmatmul.msk.f32.gmra.mxu1 %vm417_vm1, %v2822_v21 }
  0x74   : > { %2230 = vmatmul.msk.f32.gmra.mxu2 %vm417_vm1, %v2822_v21 }
  0x77   : > { %2250 = vmatmul.msk.f32.gmra.mxu3 %vm417_vm1, %v2822_v21 }
  0x79   : > { %2197 = vmatmul.msk.f32.gmra.mxu0 %vm417_vm1, %v2833_v22 }
  0x7a   : > { %2214 = vmatmul.msk.f32.gmra.mxu1 %vm417_vm1, %v2833_v22 }
  0x7c   : > { %2231 = vmatmul.msk.f32.gmra.mxu2 %vm417_vm1, %v2833_v22 }
  0x7f   : > { %2251 = vmatmul.msk.f32.gmra.mxu3 %vm417_vm1, %v2833_v22 }
  0x81   : > { %2198 = vmatmul.msk.f32.gmra.mxu0 %vm417_vm1, %v2844_v23 }
  0x82   : > { %2215 = vmatmul.msk.f32.gmra.mxu1 %vm417_vm1, %v2844_v23 }
  0x84   : > { %2232 = vmatmul.msk.f32.gmra.mxu2 %vm417_vm1, %v2844_v23 }
  0x87   : > { %2252 = vmatmul.msk.f32.gmra.mxu3 %vm417_vm1, %v2844_v23 }
  0x89   : > { %2199 = vmatmul.msk.f32.gmra.mxu0 %vm417_vm1, %v2855_v24 }
  0x8a   : > { %2216 = vmatmul.msk.f32.gmra.mxu1 %vm417_vm1, %v2855_v24 }
  0x8c   : > { %2233 = vmatmul.msk.f32.gmra.mxu2 %vm417_vm1, %v2855_v24 }
  0x8f   : > { %2253 = vmatmul.msk.f32.gmra.mxu3 %vm417_vm1, %v2855_v24 }
  0x91   : > { %2200 = vmatmul.msk.f32.gmra.mxu0 %vm417_vm1, %v2866_v25 }
  0x92   : > { %2217 = vmatmul.msk.f32.gmra.mxu1 %vm417_vm1, %v2866_v25 }
  0x94   : > { %2234 = vmatmul.msk.f32.gmra.mxu2 %vm417_vm1, %v2866_v25 }
  0x97   : > { %2254 = vmatmul.msk.f32.gmra.mxu3 %vm417_vm1, %v2866_v25 }
  0x99   : > { %2201 = vmatmul.msk.f32.gmra.mxu0 %vm417_vm1, %v2877_v26 }
  0x9a   : > { %2218 = vmatmul.msk.f32.gmra.mxu1 %vm417_vm1, %v2877_v26 }
  0x9c   : > { %2235 = vmatmul.msk.f32.gmra.mxu2 %vm417_vm1, %v2877_v26 }
  0x9f   : > { %2255 = vmatmul.msk.f32.gmra.mxu3 %vm417_vm1, %v2877_v26 }
  0xa1   : > { %2202 = vmatmul.msk.f32.gmra.mxu0 %vm417_vm1, %v2888_v27 }
  0xa2   : > { %2219 = vmatmul.msk.f32.gmra.mxu1 %vm417_vm1, %v2888_v27 }
  0xa4   : > { %2236 = vmatmul.msk.f32.gmra.mxu2 %vm417_vm1, %v2888_v27 }
  0xa7   : > { %2256 = vmatmul.msk.f32.gmra.mxu3 %vm417_vm1, %v2888_v27 }
  0xa9   : > { %2203 = vmatmul.msk.f32.gmra.mxu0 %vm417_vm1, %v2899_v28 }
  0xaa   : > { %2220 = vmatmul.msk.f32.gmra.mxu1 %vm417_vm1, %v2899_v28 }
  0xac   : > { %2237 = vmatmul.msk.f32.gmra.mxu2 %vm417_vm1, %v2899_v28 }
  0xaf   : > { %2257 = vmatmul.msk.f32.gmra.mxu3 %vm417_vm1, %v2899_v28 }
  0xb1   : > { %2204 = vmatmul.msk.f32.gmra.mxu0 %vm417_vm1, %v2918_v32 }
  0xb2   : > { %2221 = vmatmul.msk.f32.gmra.mxu1 %vm417_vm1, %v2918_v32 }
  0xb4   : > { %2238 = vmatmul.msk.f32.gmra.mxu2 %vm417_vm1, %v2918_v32 }
  0xb7   : > { %2258 = vmatmul.msk.f32.gmra.mxu3 %vm417_vm1, %v2918_v32 }
  0xb9   : > { %2205 = vmatmul.msk.f32.gmra.mxu0 %vm417_vm1, %v2931_v33 }
  0xba   : > { %2222 = vmatmul.msk.f32.gmra.mxu1 %vm417_vm1, %v2931_v33 }
  0xbc   : > { %2239 = vmatmul.msk.f32.gmra.mxu2 %vm417_vm1, %v2931_v33 }
  0xbf   : > { %2259 = vmatmul.msk.f32.gmra.mxu3 %vm417_vm1, %v2931_v33 }
  0xc1   : > { %2206 = vmatmul.msk.f32.gmra.mxu0 %vm417_vm1, %v2946_v35 }
  0xc2   : > { %2223 = vmatmul.msk.f32.gmra.mxu1 %vm417_vm1, %v2946_v35 }
  0xc4   : > { %2240 = vmatmul.msk.f32.gmra.mxu2 %vm417_vm1, %v2946_v35 }
  0xc7   : > { %2260 = vmatmul.msk.f32.gmra.mxu3 %vm417_vm1, %v2946_v35 }
  0xc9   : > { %2207 = vmatmul.msk.f32.gmra.mxu0 %vm417_vm1, %v2959_v36 }
  0xca   : > { %2224 = vmatmul.msk.f32.gmra.mxu1 %vm417_vm1, %v2959_v36 }
  0xcc   : > { %2241 = vmatmul.msk.f32.gmra.mxu2 %vm417_vm1, %v2959_v36 }
  0xce   : > { %v493_v37 = vpop.f32.mrf.mxu0 }
  0xcf   : > { %v558_v38 = vpop.f32.mrf.mxu1  ;;  %671 = vxpose.xlu0.b32.start [1/16] %v493_v37, 128  ;;  %2261 = vmatmul.msk.f32.gmra.mxu3 %vm417_vm1, %v2959_v36 }
  0xd0   : > { %703 = vxpose.xlu1.b32.start [1/16] %v558_v38, 128 }
  0xd1   : > { %2263 = vmatmul.msk.f32.vlgmr.msrb.gmra.mxu0 %vm417_vm1, %v2770_v14 }
  0xd2   : > { %2280 = vmatmul.msk.f32.vlgmr.msrb.gmra.mxu1 %vm417_vm1, %v2770_v14 }
  0xd4   : > { %2300 = vmatmul.msk.f32.vlgmr.msrb.gmra.mxu2 %vm417_vm1, %v2770_v14 }
  0xd6   : > { %v496_v39 = vpop.f32.mrf.mxu0 }
  0xd7   : > { %v561_v40 = vpop.f32.mrf.mxu1  ;;  %672 = vxpose.xlu0.b32.cont [2/16] %v496_v39, 128  ;;  %v623_v41 = vpop.f32.mrf.mxu2  ;;  %2317 = vmatmul.msk.f32.vlgmr.msrb.gmra.mxu3 %vm417_vm1, %v2770_v14 }
  0xd8   : > { %704 = vxpose.xlu1.b32.cont [2/16] %v561_v40, 128  ;;  %735 = vxpose.xlu2.b32.start [1/16] %v623_v41, 128 }
  0xd9   : > { %2264 = vmatmul.msk.f32.gmra.mxu0 %vm417_vm1, %v2789_v18 }
  0xda   : > { %2281 = vmatmul.msk.f32.gmra.mxu1 %vm417_vm1, %v2789_v18  ;;  %v845_v12 = vpop.f32.mrf.mxu3 }
  0xdc   : > { %2301 = vmatmul.msk.f32.gmra.mxu2 %vm417_vm1, %v2789_v18 }
  0xde   : > { %v499_v42 = vpop.f32.mrf.mxu0 }
  0xdf   : > { %v564_v43 = vpop.f32.mrf.mxu1  ;;  %673 = vxpose.xlu0.b32.cont [3/16] %v499_v42, 128  ;;  %v626_v44 = vpop.f32.mrf.mxu2  ;;  %2318 = vmatmul.msk.f32.gmra.mxu3 %vm417_vm1, %v2789_v18 }
  0xe0   : > { %705 = vxpose.xlu1.b32.cont [3/16] %v564_v43, 128  ;;  %736 = vxpose.xlu2.b32.cont [2/16] %v626_v44, 128 }
  0xe1   : > { %2265 = vmatmul.msk.f32.gmra.mxu0 %vm417_vm1, %v2800_v19 }
  0xe2   : > { %2282 = vmatmul.msk.f32.gmra.mxu1 %vm417_vm1, %v2800_v19  ;;  %v848_v30 = vpop.f32.mrf.mxu3 }
  0xe4   : > { %2302 = vmatmul.msk.f32.gmra.mxu2 %vm417_vm1, %v2800_v19 }
  0xe6   : > { %v502_v45 = vpop.f32.mrf.mxu0 }
  0xe7   : > { %v567_v46 = vpop.f32.mrf.mxu1  ;;  %674 = vxpose.xlu0.b32.cont [4/16] %v502_v45, 128  ;;  %v629_v47 = vpop.f32.mrf.mxu2  ;;  %2319 = vmatmul.msk.f32.gmra.mxu3 %vm417_vm1, %v2800_v19 }
  0xe8   : > { %706 = vxpose.xlu1.b32.cont [4/16] %v567_v46, 128  ;;  %737 = vxpose.xlu2.b32.cont [3/16] %v629_v47, 128 }
  0xe9   : > { %2266 = vmatmul.msk.f32.gmra.mxu0 %vm417_vm1, %v2811_v20 }
  0xea   : > { %2283 = vmatmul.msk.f32.gmra.mxu1 %vm417_vm1, %v2811_v20  ;;  %v851_v38 = vpop.f32.mrf.mxu3 }
  0xec   : > { %2303 = vmatmul.msk.f32.gmra.mxu2 %vm417_vm1, %v2811_v20 }
  0xee   : > { %v505_v48 = vpop.f32.mrf.mxu0 }
  0xef   : > { %v570_v49 = vpop.f32.mrf.mxu1  ;;  %675 = vxpose.xlu0.b32.cont [5/16] %v505_v48, 128  ;;  %v632_v50 = vpop.f32.mrf.mxu2  ;;  %2320 = vmatmul.msk.f32.gmra.mxu3 %vm417_vm1, %v2811_v20 }
  0xf0   : > { %707 = vxpose.xlu1.b32.cont [5/16] %v570_v49, 128  ;;  %738 = vxpose.xlu2.b32.cont [4/16] %v632_v50, 128 }
  0xf1   : > { %2267 = vmatmul.msk.f32.gmra.mxu0 %vm417_vm1, %v2822_v21 }
  0xf2   : > { %2284 = vmatmul.msk.f32.gmra.mxu1 %vm417_vm1, %v2822_v21  ;;  %v854_v42 = vpop.f32.mrf.mxu3 }
  0xf4   : > { %2304 = vmatmul.msk.f32.gmra.mxu2 %vm417_vm1, %v2822_v21 }
  0xf6   : > { %v508_v51 = vpop.f32.mrf.mxu0 }
  0xf7   : > { %v573_v52 = vpop.f32.mrf.mxu1  ;;  %676 = vxpose.xlu0.b32.cont [6/16] %v508_v51, 128  ;;  %v635_v53 = vpop.f32.mrf.mxu2  ;;  %2321 = vmatmul.msk.f32.gmra.mxu3 %vm417_vm1, %v2822_v21 }
  0xf8   : > { %708 = vxpose.xlu1.b32.cont [6/16] %v573_v52, 128  ;;  %739 = vxpose.xlu2.b32.cont [5/16] %v635_v53, 128 }
  0xf9   : > { %2268 = vmatmul.msk.f32.gmra.mxu0 %vm417_vm1, %v2833_v22 }
  0xfa   : > { %2285 = vmatmul.msk.f32.gmra.mxu1 %vm417_vm1, %v2833_v22  ;;  %v857_v46 = vpop.f32.mrf.mxu3 }
  0xfc   : > { %2305 = vmatmul.msk.f32.gmra.mxu2 %vm417_vm1, %v2833_v22 }
  0xfe   : > { %v511_v54 = vpop.f32.mrf.mxu0 }
  0xff   : > { %v576_v55 = vpop.f32.mrf.mxu1  ;;  %677 = vxpose.xlu0.b32.cont [7/16] %v511_v54, 128  ;;  %v638_v56 = vpop.f32.mrf.mxu2  ;;  %2322 = vmatmul.msk.f32.gmra.mxu3 %vm417_vm1, %v2833_v22 }
 0x100   : > { %709 = vxpose.xlu1.b32.cont [7/16] %v576_v55, 128  ;;  %740 = vxpose.xlu2.b32.cont [6/16] %v638_v56, 128  ;;  %v3135_v56 = vld [vmem:[#allocation3] ss:$0 sm:$0xff] }
 0x101   : > { %2269 = vmatmul.msk.f32.gmra.mxu0 %vm417_vm1, %v2844_v23  ;;  %v3184_v13 = vadd.f32 %v3135_v56, %v316_v8 }
 0x102   : > { %2286 = vmatmul.msk.f32.gmra.mxu1 %vm417_vm1, %v2844_v23  ;;  %v860_v49 = vpop.f32.mrf.mxu3 }
 0x104   : > { %2306 = vmatmul.msk.f32.gmra.mxu2 %vm417_vm1, %v2844_v23 }
 0x106   : > { %v514_v57 = vpop.f32.mrf.mxu0 }
 0x107   : > { %v579_v58 = vpop.f32.mrf.mxu1  ;;  %678 = vxpose.xlu0.b32.cont [8/16] %v514_v57, 128  ;;  %v641_v59 = vpop.f32.mrf.mxu2  ;;  %2323 = vmatmul.msk.f32.gmra.mxu3 %vm417_vm1, %v2844_v23  ;;  %v347_v57 = vld [vmem:[%s2759_s29 + $0x100] sm:$0xff] }
 0x108   : > { %710 = vxpose.xlu1.b32.cont [8/16] %v579_v58, 128  ;;  %741 = vxpose.xlu2.b32.cont [7/16] %v641_v59, 128  ;;  %v315_v58 = vld [vmem:[%s2759_s29] sm:$0xff] }
 0x109   : > { %2270 = vmatmul.msk.f32.gmra.mxu0 %vm417_vm1, %v2855_v24 }
 0x10a   : > { %2287 = vmatmul.msk.f32.gmra.mxu1 %vm417_vm1, %v2855_v24  ;;  %v3119_v52 = vpop.f32.mrf.mxu3 }
 0x10c   : > { %2307 = vmatmul.msk.f32.gmra.mxu2 %vm417_vm1, %v2855_v24 }
 0x10e   : > { %v517_v60 = vpop.f32.mrf.mxu0 }
 0x10f   : > { %v582_v61 = vpop.f32.mrf.mxu1  ;;  %679 = vxpose.xlu0.b32.cont [9/16] %v517_v60, 128  ;;  %v644_v62 = vpop.f32.mrf.mxu2  ;;  %2324 = vmatmul.msk.f32.gmra.mxu3 %vm417_vm1, %v2855_v24  ;;  %v3146_v60 = vadd.f32 %v3135_v56, %v347_v57 }
 0x110   : > { %711 = vxpose.xlu1.b32.cont [9/16] %v582_v61, 128  ;;  %742 = vxpose.xlu2.b32.cont [8/16] %v644_v62, 128 }
 0x111   : > { %2271 = vmatmul.msk.f32.gmra.mxu0 %vm417_vm1, %v2866_v25 }
 0x112   : > { %2288 = vmatmul.msk.f32.gmra.mxu1 %vm417_vm1, %v2866_v25  ;;  %v3129_v55 = vpop.f32.mrf.mxu3 }
 0x114   : > { %2308 = vmatmul.msk.f32.gmra.mxu2 %vm417_vm1, %v2866_v25 }
 0x116   : > { %v520_v63 = vpop.f32.mrf.mxu0 }
 0x117   : > { %v585_v0 = vpop.f32.mrf.mxu1  ;;  %680 = vxpose.xlu0.b32.cont [10/16] %v520_v63, 128  ;;  %v647_v1 = vpop.f32.mrf.mxu2  ;;  %2325 = vmatmul.msk.f32.gmra.mxu3 %vm417_vm1, %v2866_v25 }
 0x118   : > { %712 = vxpose.xlu1.b32.cont [10/16] %v585_v0, 128  ;;  %743 = vxpose.xlu2.b32.cont [9/16] %v647_v1, 128 }
 0x119   : > { %2272 = vmatmul.msk.f32.gmra.mxu0 %vm417_vm1, %v2877_v26 }
 0x11a   : > { %2289 = vmatmul.msk.f32.gmra.mxu1 %vm417_vm1, %v2877_v26  ;;  %v3148_v62 = vpop.f32.mrf.mxu3 }
 0x11c   : > { %2309 = vmatmul.msk.f32.gmra.mxu2 %vm417_vm1, %v2877_v26 }
 0x11e   : > { %v523_v2 = vpop.f32.mrf.mxu0 }
 0x11f   : > { %v588_v3 = vpop.f32.mrf.mxu1  ;;  %681 = vxpose.xlu0.b32.cont [11/16] %v523_v2, 128  ;;  %v650_v4 = vpop.f32.mrf.mxu2  ;;  %2326 = vmatmul.msk.f32.gmra.mxu3 %vm417_vm1, %v2877_v26 }
 0x120   : > { %713 = vxpose.xlu1.b32.cont [11/16] %v588_v3, 128  ;;  %744 = vxpose.xlu2.b32.cont [10/16] %v650_v4, 128  ;;  %v348_v4 = vld [vmem:[%s2759_s29 + $0x108] sm:$0xff] }
 0x121   : > { %2273 = vmatmul.msk.f32.gmra.mxu0 %vm417_vm1, %v2888_v27 }
 0x122   : > { %2290 = vmatmul.msk.f32.gmra.mxu1 %vm417_vm1, %v2888_v27 }
 0x124   : > { %2310 = vmatmul.msk.f32.gmra.mxu2 %vm417_vm1, %v2888_v27 }
 0x126   : > { %v526_v5 = vpop.f32.mrf.mxu0 }
 0x127   : > { %v591_v6 = vpop.f32.mrf.mxu1  ;;  %682 = vxpose.xlu0.b32.cont [12/16] %v526_v5, 128  ;;  %v653_v7 = vpop.f32.mrf.mxu2  ;;  %2327 = vmatmul.msk.f32.gmra.mxu3 %vm417_vm1, %v2888_v27 }
 0x128   : > { %714 = vxpose.xlu1.b32.cont [12/16] %v591_v6, 128  ;;  %745 = vxpose.xlu2.b32.cont [11/16] %v653_v7, 128  ;;  %v332_v7 = vld [vmem:[%s2759_s29 + $0x88] sm:$0xff] }
 0x129   : > { %2274 = vmatmul.msk.f32.gmra.mxu0 %vm417_vm1, %v2899_v28 }
 0x12a   : > { %2291 = vmatmul.msk.f32.gmra.mxu1 %vm417_vm1, %v2899_v28 }
 0x12c   : > { %2311 = vmatmul.msk.f32.gmra.mxu2 %vm417_vm1, %v2899_v28 }
 0x12e   : > { %v529_v9 = vpop.f32.mrf.mxu0 }
 0x12f   : > { %v594_v10 = vpop.f32.mrf.mxu1  ;;  %683 = vxpose.xlu0.b32.cont [13/16] %v529_v9, 128  ;;  %v656_v11 = vpop.f32.mrf.mxu2  ;;  %2328 = vmatmul.msk.f32.gmra.mxu3 %vm417_vm1, %v2899_v28 }
 0x130   : > { %715 = vxpose.xlu1.b32.cont [13/16] %v594_v10, 128  ;;  %746 = vxpose.xlu2.b32.cont [12/16] %v656_v11, 128  ;;  %v3175_v10 = vadd.f32 %v3135_v56, %v348_v4  ;;  %v335_v4 = vld [vmem:[%s2759_s29 + $0xa0] sm:$0xff] }
 0x131   : > { %2275 = vmatmul.msk.f32.gmra.mxu0 %vm417_vm1, %v2918_v32 }
 0x132   : > { %2292 = vmatmul.msk.f32.gmra.mxu1 %vm417_vm1, %v2918_v32  ;;  %4027 = vst [vmem:[#allocation12_spill] sm:$0xff] %v3175_v10 }
 0x134   : > { %2312 = vmatmul.msk.f32.gmra.mxu2 %vm417_vm1, %v2918_v32 }
 0x136   : > { %v532_v15 = vpop.f32.mrf.mxu0 }
 0x137   : > { %v597_v16 = vpop.f32.mrf.mxu1  ;;  %684 = vxpose.xlu0.b32.cont [14/16] %v532_v15, 128  ;;  %v659_v29 = vpop.f32.mrf.mxu2  ;;  %2329 = vmatmul.msk.f32.gmra.mxu3 %vm417_vm1, %v2918_v32 }
 0x138   : > { %716 = vxpose.xlu1.b32.cont [14/16] %v597_v16, 128  ;;  %747 = vxpose.xlu2.b32.cont [13/16] %v659_v29, 128 }
 0x139   : > { %2276 = vmatmul.msk.f32.gmra.mxu0 %vm417_vm1, %v2931_v33 }
 0x13a   : > { %2293 = vmatmul.msk.f32.gmra.mxu1 %vm417_vm1, %v2931_v33 }
 0x13c   : > { %2313 = vmatmul.msk.f32.gmra.mxu2 %vm417_vm1, %v2931_v33 }
 0x13e   : > { %v535_v31 = vpop.f32.mrf.mxu0 }
 0x13f   : > { %v600_v34 = vpop.f32.mrf.mxu1  ;;  %685 = vxpose.xlu0.b32.cont [15/16] %v535_v31, 128  ;;  %v662_v37 = vpop.f32.mrf.mxu2  ;;  %2330 = vmatmul.msk.f32.gmra.mxu3 %vm417_vm1, %v2931_v33 }
 0x140   : > { %717 = vxpose.xlu1.b32.cont [15/16] %v600_v34, 128  ;;  %748 = vxpose.xlu2.b32.cont [14/16] %v662_v37, 128  ;;  %v333_v37 = vld [vmem:[%s2759_s29 + $0x90] sm:$0xff] }
 0x141   : > { %2277 = vmatmul.msk.f32.gmra.mxu0 %vm417_vm1, %v2946_v35 }
 0x142   : > { %2294 = vmatmul.msk.f32.gmra.mxu1 %vm417_vm1, %v2946_v35 }
 0x144   : > { %2314 = vmatmul.msk.f32.gmra.mxu2 %vm417_vm1, %v2946_v35 }
 0x146   : > { %v538_v39 = vpop.f32.mrf.mxu0 }
 0x147   : > { %v603_v40 = vpop.f32.mrf.mxu1  ;;  %686 = vxpose.xlu0.b32.end [16/16] %v538_v39, 128  ;;  %v665_v41 = vpop.f32.mrf.mxu2  ;;  %2331 = vmatmul.msk.f32.gmra.mxu3 %vm417_vm1, %v2946_v35 }
 0x148   : > { %718 = vxpose.xlu1.b32.end [16/16] %v603_v40, 128  ;;  %749 = vxpose.xlu2.b32.cont [15/16] %v665_v41, 128 }
 0x149   : > { %2278 = vmatmul.msk.f32.gmra.mxu0 %vm417_vm1, %v2959_v36 }
 0x14a   : > { %2295 = vmatmul.msk.f32.gmra.mxu1 %vm417_vm1, %v2959_v36 }
 0x14c   : > { %2315 = vmatmul.msk.f32.gmra.mxu2 %vm417_vm1, %v2959_v36 }
 0x14e   : > { %v910_v43 = vpop.f32.mrf.mxu0 }
 0x14f   : > { %v975_v44 = vpop.f32.mrf.mxu1  ;;  %1023 = vxpose.xlu0.b32.start [1/16] %v845_v12, 128  ;;  %v668_v45 = vpop.f32.mrf.mxu2  ;;  %v3181_v12 = vadd.f32 %v3135_v56, %v332_v7  ;;  %2332 = vmatmul.msk.f32.gmra.mxu3 %vm417_vm1, %v2959_v36 }
 0x150   : > { %1055 = vxpose.xlu1.b32.start [1/16] %v910_v43, 128  ;;  %750 = vxpose.xlu2.b32.end [16/16] %v668_v45, 128 }
 0x151   : > { %2334 = vmatmul.msk.f32.vlgmr.msra.gmra.mxu0 %vm417_vm1, %v2770_v14 }
 0x152   : > { %2354 = vmatmul.msk.f32.vlgmr.msra.gmra.mxu1 %vm417_vm1, %v2770_v14 }
 0x154   : > { %2371 = vmatmul.msk.f32.vlgmr.msra.gmra.mxu2 %vm417_vm1, %v2770_v14 }
 0x156   : > { %v913_v47 = vpop.f32.mrf.mxu0 }
 0x157   : > { %v978_v48 = vpop.f32.mrf.mxu1  ;;  %1024 = vxpose.xlu0.b32.cont [2/16] %v848_v30, 128  ;;  %v349_v30 = vld [vmem:[%s2759_s29 + $0x110] sm:$0xff]  ;;  %2388 = vmatmul.msk.f32.vlgmr.msra.gmra.mxu3 %vm417_vm1, %v2770_v14  ;;  %v3373_v14 = vpop.f32.mrf.mxu2 }
 0x158   : > { %1056 = vxpose.xlu1.b32.cont [2/16] %v913_v47, 128  ;;  %1087 = vxpose.xlu2.b32.start [1/16] %v975_v44, 128  ;;  %v3203_v40 = vadd.f32 %v3135_v56, %v349_v30 }
 0x159   : > { %2335 = vmatmul.msk.f32.gmra.mxu0 %vm417_vm1, %v2789_v18 }
 0x15a   : > { %2355 = vmatmul.msk.f32.gmra.mxu1 %vm417_vm1, %v2789_v18 }
 0x15c   : > { %2372 = vmatmul.msk.f32.gmra.mxu2 %vm417_vm1, %v2789_v18 }
 0x15e   : > { %v916_v50 = vpop.f32.mrf.mxu0 }
 0x15f   : > { %v981_v51 = vpop.f32.mrf.mxu1  ;;  %1025 = vxpose.xlu0.b32.cont [3/16] %v851_v38, 128  ;;  %v317_v38 = vld [vmem:[%s2759_s29 + $0x10] sm:$0xff] }
 0x160   : > { %1057 = vxpose.xlu1.b32.cont [3/16] %v916_v50, 128  ;;  %1088 = vxpose.xlu2.b32.cont [2/16] %v978_v48, 128  ;;  %v3213_v43 = vadd.f32 %v3135_v56, %v317_v38  ;;  %v350_v48 = vld [vmem:[%s2759_s29 + $0x118] sm:$0xff] }
 0x161   : > { %2336 = vmatmul.msk.f32.gmra.mxu0 %vm417_vm1, %v2800_v19 }
 0x162   : > { %2356 = vmatmul.msk.f32.gmra.mxu1 %vm417_vm1, %v2800_v19 }
 0x164   : > { %2373 = vmatmul.msk.f32.gmra.mxu2 %vm417_vm1, %v2800_v19  ;;  %v331_v19 = vld [vmem:[%s2759_s29 + $0x80] sm:$0xff] }
 0x165   : > { %v3151_v63 = vadd.f32 %v3135_v56, %v331_v19 }
 0x166   : > { %v919_v53 = vpop.f32.mrf.mxu0 }
 0x167   : > { %v984_v54 = vpop.f32.mrf.mxu1  ;;  %1026 = vxpose.xlu0.b32.cont [4/16] %v854_v42, 128  ;;  %v3210_v42 = vadd.f32 %v3135_v56, %v333_v37  ;;  %v320_v37 = vld [vmem:[%s2759_s29 + $0x28] sm:$0xff] }
 0x168   : > { %1058 = vxpose.xlu1.b32.cont [4/16] %v919_v53, 128  ;;  %1089 = vxpose.xlu2.b32.cont [3/16] %v981_v51, 128  ;;  %v334_v51 = vld [vmem:[%s2759_s29 + $0x98] sm:$0xff] }
 0x169   : > { %2337 = vmatmul.msk.f32.gmra.mxu0 %vm417_vm1, %v2811_v20  ;;  %v3239_v19 = vadd.f32 %v3135_v56, %v334_v51 }
 0x16a   : > { %2357 = vmatmul.msk.f32.gmra.mxu1 %vm417_vm1, %v2811_v20 }
 0x16c   : > { %2374 = vmatmul.msk.f32.gmra.mxu2 %vm417_vm1, %v2811_v20  ;;  %v3154_v20 = vadd.f32 %v3135_v56, %v315_v58 }
 0x16e   : > { %v922_v59 = vpop.f32.mrf.mxu0 }
 0x16f   : > { %v987_v61 = vpop.f32.mrf.mxu1  ;;  %1027 = vxpose.xlu0.b32.cont [5/16] %v857_v46, 128 }
 0x170   : > { %1059 = vxpose.xlu1.b32.cont [5/16] %v922_v59, 128  ;;  %1090 = vxpose.xlu2.b32.cont [4/16] %v984_v54, 128  ;;  %v3232_v54 = vadd.f32 %v3135_v56, %v350_v48 }
 0x171   : > { %v751_v0 = vpop.trf.xlu2  ;;  %2338 = vmatmul.msk.f32.gmra.mxu0 %vm417_vm1, %v2822_v21 }
 0x172   : > { %2358 = vmatmul.msk.f32.gmra.mxu1 %vm417_vm1, %v2822_v21  ;;  %v799_v1 = vadd.f32 %v751_v0, %v3146_v60 }
 0x173   : > { %v687_v3 = vpop.trf.xlu0 }
 0x174   : > { %v719_v2 = vpop.trf.xlu1  ;;  %2375 = vmatmul.msk.f32.gmra.mxu2 %vm417_vm1, %v2822_v21  ;;  %1999 = vst [vmem:[%s3166_s7 + $0x400] sm:$0xff] %v799_v1  ;;  %v767_v6 = vadd.f32 %v687_v3, %v3154_v20  ;;  %v3178_v21 = vpop.f32.mrf.mxu3  ;;  %v351_v1 = vld [vmem:[%s2759_s29 + $0x120] sm:$0xff]  ;;  %2389 = vmatmul.msk.f32.gmra.mxu3 %vm417_vm1, %v2789_v18 }
 0x175   : > { %v783_v5 = vadd.f32 %v719_v2, %v3151_v63  ;;  %v3261_v7 = vadd.f32 %v3135_v56, %v351_v1 }
 0x176   : > { %v925_v9 = vpop.f32.mrf.mxu0  ;;  %1871 = vst [vmem:[%s3166_s7] sm:$0xff] %v767_v6 }
 0x177   : > { %1935 = vst [vmem:[%s3166_s7 + $0x200] sm:$0xff] %v783_v5  ;;  %v990_v11 = vpop.f32.mrf.mxu1  ;;  %1028 = vxpose.xlu0.b32.cont [6/16] %v860_v49, 128  ;;  %v319_v5 = vld [vmem:[%s2759_s29 + $0x20] sm:$0xff] }
 0x178   : > { %1060 = vxpose.xlu1.b32.cont [6/16] %v925_v9, 128  ;;  %1091 = vxpose.xlu2.b32.cont [5/16] %v987_v61, 128  ;;  %v3268_v9 = vadd.f32 %v3135_v56, %v335_v4 }
 0x179   : > { %v752_v15 = vpop.trf.xlu2  ;;  %2339 = vmatmul.msk.f32.gmra.mxu0 %vm417_vm1, %v2833_v22 }
 0x17a   : > { %2359 = vmatmul.msk.f32.gmra.mxu1 %vm417_vm1, %v2833_v22  ;;  %v800_v16 = vadd.f32 %v752_v15, %v3175_v10 }
 0x17b   : > { %v688_v29 = vpop.trf.xlu0 }
 0x17c   : > { %v720_v17 = vpop.trf.xlu1  ;;  %2376 = vmatmul.msk.f32.gmra.mxu2 %vm417_vm1, %v2833_v22  ;;  %2003 = vst [vmem:[%s3166_s7 + $0x420] sm:$0xff] %v800_v16  ;;  %v768_v34 = vadd.f32 %v688_v29, %v3184_v13  ;;  %v3207_v22 = vpop.f32.mrf.mxu3  ;;  %v352_v29 = vld [vmem:[%s2759_s29 + $0x128] sm:$0xff] }
 0x17d   : > { %v784_v31 = vadd.f32 %v720_v17, %v3181_v12 }
 0x17e   : > { %v928_v39 = vpop.f32.mrf.mxu0  ;;  %1875 = vst [vmem:[%s3166_s7 + $0x20] sm:$0xff] %v768_v34  ;;  %v336_v34 = vld [vmem:[%s2759_s29 + $0xa8] sm:$0xff] }
 0x17f   : > { %1939 = vst [vmem:[%s3166_s7 + $0x220] sm:$0xff] %v784_v31  ;;  %v993_v41 = vpop.f32.mrf.mxu1  ;;  %1029 = vxpose.xlu0.b32.cont [7/16] %v3119_v52, 128  ;;  %v318_v52 = vld [vmem:[%s2759_s29 + $0x18] sm:$0xff] }
 0x180   : > { %1061 = vxpose.xlu1.b32.cont [7/16] %v928_v39, 128  ;;  %1092 = vxpose.xlu2.b32.cont [6/16] %v990_v11, 128  ;;  %v3242_v58 = vadd.f32 %v3135_v56, %v318_v52  ;;  %v3271_v11 = vadd.f32 %v3135_v56, %v319_v5  ;;  %v3288_v39 = vadd.f32 %v3135_v56, %v352_v29 }
 0x181   : > { %v753_v44 = vpop.trf.xlu2  ;;  %2340 = vmatmul.msk.f32.gmra.mxu0 %vm417_vm1, %v2844_v23 }
 0x182   : > { %2360 = vmatmul.msk.f32.gmra.mxu1 %vm417_vm1, %v2844_v23  ;;  %v801_v45 = vadd.f32 %v753_v44, %v3203_v40 }
 0x183   : > { %v689_v47 = vpop.trf.xlu0 }
 0x184   : > { %v721_v46 = vpop.trf.xlu1  ;;  %2377 = vmatmul.msk.f32.gmra.mxu2 %vm417_vm1, %v2844_v23  ;;  %2007 = vst [vmem:[%s3166_s7 + $0x440] sm:$0xff] %v801_v45  ;;  %v769_v50 = vadd.f32 %v689_v47, %v3213_v43  ;;  %v3236_v23 = vpop.f32.mrf.mxu3  ;;  %v3295_v45 = vadd.f32 %v3135_v56, %v336_v34 }
 0x185   : > { %v785_v49 = vadd.f32 %v721_v46, %v3210_v42  ;;  %v3298_v46 = vadd.f32 %v3135_v56, %v320_v37 }
 0x186   : > { %v931_v53 = vpop.f32.mrf.mxu0  ;;  %1879 = vst [vmem:[%s3166_s7 + $0x40] sm:$0xff] %v769_v50  ;;  %v353_v50 = vld [vmem:[%s2759_s29 + $0x130] sm:$0xff] }
 0x187   : > { %1943 = vst [vmem:[%s3166_s7 + $0x240] sm:$0xff] %v785_v49  ;;  %v996_v57 = vpop.f32.mrf.mxu1  ;;  %1030 = vxpose.xlu0.b32.cont [8/16] %v3129_v55, 128 }
 0x188   : > { %1062 = vxpose.xlu1.b32.cont [8/16] %v931_v53, 128  ;;  %1093 = vxpose.xlu2.b32.cont [7/16] %v993_v41, 128  ;;  %v337_v53 = vld [vmem:[%s2759_s29 + $0xb0] sm:$0xff] }
 0x189   : > { %v754_v59 = vpop.trf.xlu2  ;;  %2341 = vmatmul.msk.f32.gmra.mxu0 %vm417_vm1, %v2855_v24  ;;  %v3322_v1 = vadd.f32 %v3135_v56, %v337_v53 }
 0x18a   : > { %2361 = vmatmul.msk.f32.gmra.mxu1 %vm417_vm1, %v2855_v24  ;;  %v802_v55 = vadd.f32 %v754_v59, %v3232_v54 }
 0x18b   : > { %v690_v0 = vpop.trf.xlu0 }
 0x18c   : > { %v722_v61 = vpop.trf.xlu1  ;;  %2378 = vmatmul.msk.f32.gmra.mxu2 %vm417_vm1, %v2855_v24  ;;  %2011 = vst [vmem:[%s3166_s7 + $0x460] sm:$0xff] %v802_v55  ;;  %v770_v3 = vadd.f32 %v690_v0, %v3242_v58  ;;  %v3265_v24 = vpop.f32.mrf.mxu3  ;;  %v3315_v55 = vadd.f32 %v3135_v56, %v353_v50  ;;  %v339_v50 = vld [vmem:[%s2759_s29 + $0xc0] sm:$0xff] }
 0x18d   : > { %v786_v2 = vadd.f32 %v722_v61, %v3239_v19 }
 0x18e   : > { %v934_v6 = vpop.f32.mrf.mxu0  ;;  %1883 = vst [vmem:[%s3166_s7 + $0x60] sm:$0xff] %v770_v3 }
 0x18f   : > { %1947 = vst [vmem:[%s3166_s7 + $0x260] sm:$0xff] %v786_v2  ;;  %v999_v8 = vpop.f32.mrf.mxu1  ;;  %1031 = vxpose.xlu0.b32.cont [9/16] %v3148_v62, 128 }
 0x190   : > { %1063 = vxpose.xlu1.b32.cont [9/16] %v934_v6, 128  ;;  %1094 = vxpose.xlu2.b32.cont [8/16] %v996_v57, 128  ;;  %v321_v57 = vld [vmem:[%s2759_s29 + $0x30] sm:$0xff]  ;;  %v354_v6 = vld [vmem:[%s2759_s29 + $0x138] sm:$0xff] }
 0x191   : > { %v755_v15 = vpop.trf.xlu2  ;;  %2342 = vmatmul.msk.f32.gmra.mxu0 %vm417_vm1, %v2866_v25  ;;  %v3325_v2 = vadd.f32 %v3135_v56, %v321_v57  ;;  %v3342_v29 = vadd.f32 %v3135_v56, %v354_v6 }
 0x192   : > { %2362 = vmatmul.msk.f32.gmra.mxu1 %vm417_vm1, %v2866_v25  ;;  %v803_v62 = vadd.f32 %v755_v15, %v3261_v7 }
 0x193   : > { %v691_v17 = vpop.trf.xlu0 }
 0x194   : > { %v723_v16 = vpop.trf.xlu1  ;;  %2015 = vst [vmem:[%s3166_s7 + $0x480] sm:$0xff] %v803_v62  ;;  %v771_v31 = vadd.f32 %v691_v17, %v3271_v11  ;;  %v3292_v44 = vpop.f32.mrf.mxu3  ;;  %v338_v62 = vld [vmem:[%s2759_s29 + $0xb8] sm:$0xff]  ;;  %2379 = vmatmul.msk.f32.gmra.mxu2 %vm417_vm1, %v2866_v25 }
 0x195   : > { %v787_v30 = vadd.f32 %v723_v16, %v3268_v9  ;;  %v322_v16 = vld [vmem:[%s2759_s29 + $0x38] sm:$0xff]  ;;  %v3349_v34 = vadd.f32 %v3135_v56, %v338_v62 }
 0x196   : > { %v937_v38 = vpop.f32.mrf.mxu0  ;;  %1887 = vst [vmem:[%s3166_s7 + $0x80] sm:$0xff] %v771_v31  ;;  %v3352_v37 = vadd.f32 %v3135_v56, %v322_v16 }
 0x197   : > { %1951 = vst [vmem:[%s3166_s7 + $0x280] sm:$0xff] %v787_v30  ;;  %v1002_v41 = vpop.f32.mrf.mxu1  ;;  %1032 = vxpose.xlu0.b32.cont [10/16] %v3178_v21, 128 }
 0x198   : > { %1064 = vxpose.xlu1.b32.cont [10/16] %v937_v38, 128  ;;  %1095 = vxpose.xlu2.b32.cont [9/16] %v999_v8, 128 }
 0x199   : > { %v756_v47 = vpop.trf.xlu2  ;;  %2343 = vmatmul.msk.f32.gmra.mxu0 %vm417_vm1, %v2877_v26 }
 0x19a   : > { %2363 = vmatmul.msk.f32.gmra.mxu1 %vm417_vm1, %v2877_v26  ;;  %v804_v21 = vadd.f32 %v756_v47, %v3288_v39 }
 0x19b   : > { %v692_v49 = vpop.trf.xlu0 }
 0x19c   : > { %v724_v48 = vpop.trf.xlu1  ;;  %2019 = vst [vmem:[%s3166_s7 + $0x4a0] sm:$0xff] %v804_v21  ;;  %v772_v52 = vadd.f32 %v692_v49, %v3298_v46  ;;  %v3319_v0 = vpop.f32.mrf.mxu3  ;;  %v355_v21 = vld [vmem:[%s2759_s29 + $0x140] sm:$0xff] }
 0x19d   : > { %v788_v51 = vadd.f32 %v724_v48, %v3295_v45  ;;  %v3369_v53 = vadd.f32 %v3135_v56, %v355_v21  ;;  %v357_v21 = vld [vmem:[%s2759_s29 + $0x150] sm:$0xff] }
 0x19e   : > { %v940_v59 = vpop.f32.mrf.mxu0  ;;  %1891 = vst [vmem:[%s3166_s7 + $0xa0] sm:$0xff] %v772_v52 }
 0x19f   : > { %1955 = vst [vmem:[%s3166_s7 + $0x2a0] sm:$0xff] %v788_v51  ;;  %v1005_v61 = vpop.f32.mrf.mxu1  ;;  %1033 = vxpose.xlu0.b32.cont [11/16] %v3207_v22, 128  ;;  %v323_v51 = vld [vmem:[%s2759_s29 + $0x40] sm:$0xff] }
 0x1a0   : > { %1065 = vxpose.xlu1.b32.cont [11/16] %v940_v59, 128  ;;  %1096 = vxpose.xlu2.b32.cont [10/16] %v1002_v41, 128  ;;  %v3378_v59 = vadd.f32 %v3135_v56, %v339_v50  ;;  %v341_v50 = vld [vmem:[%s2759_s29 + $0xd0] sm:$0xff] }
 0x1a1   : > { %v757_v3 = vpop.trf.xlu2  ;;  %2344 = vmatmul.msk.f32.gmra.mxu0 %vm417_vm1, %v2888_v27 }
 0x1a2   : > { %2364 = vmatmul.msk.f32.gmra.mxu1 %vm417_vm1, %v2888_v27  ;;  %v805_v22 = vadd.f32 %v757_v3, %v3315_v55 }
 0x1a3   : > { %v693_v5 = vpop.trf.xlu0 }
 0x1a4   : > { %v725_v4 = vpop.trf.xlu1  ;;  %2023 = vst [vmem:[%s3166_s7 + $0x4c0] sm:$0xff] %v805_v22  ;;  %v773_v15 = vadd.f32 %v693_v5, %v3325_v2  ;;  %v3346_v31 = vpop.f32.mrf.mxu3  ;;  %v356_v5 = vld [vmem:[%s2759_s29 + $0x148] sm:$0xff] }
 0x1a5   : > { %v789_v8 = vadd.f32 %v725_v4, %v3322_v1  ;;  %v3400_v16 = vadd.f32 %v3135_v56, %v356_v5 }
 0x1a6   : > { %v943_v17 = vpop.f32.mrf.mxu0  ;;  %1895 = vst [vmem:[%s3166_s7 + $0xc0] sm:$0xff] %v773_v15  ;;  %v324_v15 = vld [vmem:[%s2759_s29 + $0x48] sm:$0xff] }
 0x1a7   : > { %1959 = vst [vmem:[%s3166_s7 + $0x2c0] sm:$0xff] %v789_v8  ;;  %v1008_v30 = vpop.f32.mrf.mxu1  ;;  %1034 = vxpose.xlu0.b32.cont [12/16] %v3236_v23, 128  ;;  %v340_v8 = vld [vmem:[%s2759_s29 + $0xc8] sm:$0xff] }
 0x1a8   : > { %1066 = vxpose.xlu1.b32.cont [12/16] %v943_v17, 128  ;;  %1097 = vxpose.xlu2.b32.cont [11/16] %v1005_v61, 128  ;;  %v3381_v61 = vadd.f32 %v3135_v56, %v323_v51  ;;  %v3409_v17 = vadd.f32 %v3135_v56, %v340_v8  ;;  %v325_v51 = vld [vmem:[%s2759_s29 + $0x50] sm:$0xff]  ;;  %v358_v8 = vld [vmem:[%s2759_s29 + $0x158] sm:$0xff] }
 0x1a9   : > { %v758_v38 = vpop.trf.xlu2  ;;  %2345 = vmatmul.msk.f32.gmra.mxu0 %vm417_vm1, %v2899_v28 }
 0x1aa   : > { %2365 = vmatmul.msk.f32.gmra.mxu1 %vm417_vm1, %v2899_v28  ;;  %v806_v23 = vadd.f32 %v758_v38, %v3342_v29 }
 0x1ab   : > { %v694_v47 = vpop.trf.xlu0 }
 0x1ac   : > { %v726_v41 = vpop.trf.xlu1  ;;  %2027 = vst [vmem:[%s3166_s7 + $0x4e0] sm:$0xff] %v806_v23  ;;  %v774_v49 = vadd.f32 %v694_v47, %v3352_v37  ;;  %v3375_v57 = vpop.f32.mrf.mxu3 }
 0x1ad   : > { %v790_v48 = vadd.f32 %v726_v41, %v3349_v34 }
 0x1ae   : > { %v946_v52 = vpop.f32.mrf.mxu0  ;;  %1899 = vst [vmem:[%s3166_s7 + $0xe0] sm:$0xff] %v774_v49 }
 0x1af   : > { %1963 = vst [vmem:[%s3166_s7 + $0x2e0] sm:$0xff] %v790_v48  ;;  %v1011_v28 = vpop.f32.mrf.mxu1  ;;  %1035 = vxpose.xlu0.b32.cont [13/16] %v3265_v24, 128  ;;  %v2475_v48 = vld [vmem:[%s3996_s1 + $0x10] sm:$0xff] }
 0x1b0   : > { %1067 = vxpose.xlu1.b32.cont [13/16] %v946_v52, 128  ;;  %1098 = vxpose.xlu2.b32.cont [12/16] %v1008_v30, 128  ;;  %v3412_v30 = vadd.f32 %v3135_v56, %v324_v15  ;;  %v3433_v52 = vadd.f32 %v3135_v56, %v357_v21  ;;  %v2476_v15 = vld [vmem:[%s3996_s1 + $0x18] sm:$0xff] }
 0x1b1   : > { %v759_v24 = vpop.trf.xlu2  ;;  %2346 = vmatmul.msk.f32.gmra.mxu0 %vm417_vm1, %v2918_v32  ;;  %2390 = vmatmul.msk.f32.gmra.mxu3 %vm417_vm1, %v2475_v48 }
 0x1b2   : > { %2366 = vmatmul.msk.f32.gmra.mxu1 %vm417_vm1, %v2918_v32  ;;  %v807_v3 = vadd.f32 %v759_v24, %v3369_v53  ;;  %v3404_v32 = vpop.f32.mrf.mxu2  ;;  %2380 = vmatmul.msk.f32.gmra.mxu2 %vm417_vm1, %v2877_v26 }
 0x1b3   : > { %v695_v4 = vpop.trf.xlu0 }
 0x1b4   : > { %v727_v22 = vpop.trf.xlu1  ;;  %2031 = vst [vmem:[%s3166_s7 + $0x500] sm:$0xff] %v807_v3  ;;  %v775_v25 = vadd.f32 %v695_v4, %v3381_v61  ;;  %v3406_v18 = vpop.f32.mrf.mxu3  ;;  %v3442_v3 = vadd.f32 %v3135_v56, %v341_v50 }
 0x1b5   : > { %v791_v6 = vadd.f32 %v727_v22, %v3378_v59  ;;  %v3445_v22 = vadd.f32 %v3135_v56, %v325_v51 }
 0x1b6   : > { %v949_v62 = vpop.f32.mrf.mxu0  ;;  %1903 = vst [vmem:[%s3166_s7 + $0x100] sm:$0xff] %v775_v25 }
 0x1b7   : > { %1967 = vst [vmem:[%s3166_s7 + $0x300] sm:$0xff] %v791_v6  ;;  %1036 = vxpose.xlu0.b32.cont [14/16] %v3292_v44, 128  ;;  %v1014_v38 = vpop.f32.mrf.mxu1 }
 0x1b8   : > { %1068 = vxpose.xlu1.b32.cont [14/16] %v949_v62, 128  ;;  %1099 = vxpose.xlu2.b32.cont [13/16] %v1011_v28, 128 }
 0x1b9   : > { %v760_v44 = vpop.trf.xlu2  ;;  %2347 = vmatmul.msk.f32.gmra.mxu0 %vm417_vm1, %v2931_v33  ;;  %2391 = vmatmul.msk.f32.gmra.mxu3 %vm417_vm1, %v2476_v15 }
 0x1ba   : > { %2367 = vmatmul.msk.f32.gmra.mxu1 %vm417_vm1, %v2931_v33  ;;  %v808_v23 = vadd.f32 %v760_v44, %v3400_v16  ;;  %v3437_v28 = vpop.f32.mrf.mxu2  ;;  %2381 = vmatmul.msk.f32.gmra.mxu2 %vm417_vm1, %v2888_v27 }
 0x1bb   : > { %v696_v47 = vpop.trf.xlu0 }
 0x1bc   : > { %v728_v41 = vpop.trf.xlu1  ;;  %2035 = vst [vmem:[%s3166_s7 + $0x520] sm:$0xff] %v808_v23  ;;  %v776_v49 = vadd.f32 %v696_v47, %v3412_v30  ;;  %v3439_v24 = vpop.f32.mrf.mxu3  ;;  %v3466_v23 = vadd.f32 %v3135_v56, %v358_v8 }
 0x1bd   : > { %v792_v26 = vadd.f32 %v728_v41, %v3409_v17 }
 0x1be   : > { %v952_v33 = vpop.f32.mrf.mxu0  ;;  %1907 = vst [vmem:[%s3166_s7 + $0x120] sm:$0xff] %v776_v49 }
 0x1bf   : > { %1971 = vst [vmem:[%s3166_s7 + $0x320] sm:$0xff] %v792_v26  ;;  %1037 = vxpose.xlu0.b32.cont [15/16] %v3319_v0, 128  ;;  %v1017_v5 = vpop.f32.mrf.mxu1  ;;  %v3483_v26 = vld [vmem:[%s3996_s1 + $0x58] sm:$0xff] }
 0x1c0   : > { %1069 = vxpose.xlu1.b32.cont [15/16] %v952_v33, 128  ;;  %1100 = vxpose.xlu2.b32.cont [14/16] %v1014_v38, 128  ;;  %v342_v38 = vld [vmem:[%s2759_s29 + $0xd8] sm:$0xff]  ;;  %v359_v33 = vld [vmem:[%s2759_s29 + $0x160] sm:$0xff] }
 0x1c1   : > { %v761_v0 = vpop.trf.xlu2  ;;  %2348 = vmatmul.msk.f32.gmra.mxu0 %vm417_vm1, %v2946_v35  ;;  %v3475_v21 = vadd.f32 %v3135_v56, %v342_v38  ;;  %v3504_v8 = vadd.f32 %v3135_v56, %v359_v33 }
 0x1c2   : > { %2368 = vmatmul.msk.f32.gmra.mxu1 %vm417_vm1, %v2946_v35  ;;  %v809_v4 = vadd.f32 %v761_v0, %v3433_v52  ;;  %v326_v35 = vld [vmem:[%s2759_s29 + $0x58] sm:$0xff]  ;;  %v3470_v41 = vpop.f32.mrf.mxu2  ;;  %2382 = vmatmul.msk.f32.gmra.mxu2 %vm417_vm1, %v3483_v26 }
 0x1c3   : > { %v697_v25 = vpop.trf.xlu0  ;;  %v3478_v48 = vadd.f32 %v3135_v56, %v326_v35  ;;  %v2478_v0 = vld [vmem:[%s3996_s1 + $0x20] sm:$0xff]  ;;  %4028 = vst [vmem:[#allocation13_spill] sm:$0xff] %v3504_v8 }
 0x1c4   : > { %v729_v6 = vpop.trf.xlu1  ;;  %2039 = vst [vmem:[%s3166_s7 + $0x540] sm:$0xff] %v809_v4  ;;  %v777_v62 = vadd.f32 %v697_v25, %v3445_v22  ;;  %v3472_v47 = vpop.f32.mrf.mxu3  ;;  %2392 = vmatmul.msk.f32.gmra.mxu3 %vm417_vm1, %v2478_v0  ;;  %v343_v25 = vld [vmem:[%s2759_s29 + $0xe0] sm:$0xff] }
 0x1c5   : > { %v793_v27 = vadd.f32 %v729_v6, %v3442_v3  ;;  %v3514_v38 = vadd.f32 %v3135_v56, %v343_v25 }
 0x1c6   : > { %v955_v44 = vpop.f32.mrf.mxu0  ;;  %1911 = vst [vmem:[%s3166_s7 + $0x140] sm:$0xff] %v777_v62 }
 0x1c7   : > { %1975 = vst [vmem:[%s3166_s7 + $0x340] sm:$0xff] %v793_v27  ;;  %1038 = vxpose.xlu0.b32.end [16/16] %v3346_v31, 128  ;;  %v1020_v6 = vpop.f32.mrf.mxu1 }
 0x1c8   : > { %1070 = vxpose.xlu1.b32.end [16/16] %v955_v44, 128  ;;  %1101 = vxpose.xlu2.b32.cont [15/16] %v1017_v5, 128  ;;  %4029 = vst [vmem:[#allocation14_spill] sm:$0xff] %v3514_v38 }
 0x1c9   : > { %v762_v31 = vpop.trf.xlu2  ;;  %2349 = vmatmul.msk.f32.gmra.mxu0 %vm417_vm1, %v2959_v36 }
 0x1ca   : > { %2369 = vmatmul.msk.f32.gmra.mxu1 %vm417_vm1, %v2959_v36  ;;  %v810_v49 = vadd.f32 %v762_v31, %v3466_v23  ;;  %v327_v36 = vld [vmem:[%s2759_s29 + $0x60] sm:$0xff]  ;;  %v3509_v27 = vpop.f32.mrf.mxu2 }
 0x1cb   : > { %v698_v51 = vpop.trf.xlu0  ;;  %v3517_v35 = vadd.f32 %v3135_v56, %v327_v36 }
 0x1cc   : > { %v730_v50 = vpop.trf.xlu1  ;;  %2043 = vst [vmem:[%s3166_s7 + $0x560] sm:$0xff] %v810_v49  ;;  %v778_v5 = vadd.f32 %v698_v51, %v3478_v48  ;;  %v3511_v62 = vpop.f32.mrf.mxu3  ;;  %v2480_v51 = vld [vmem:[%s3996_s1 + $0x28] sm:$0xff] }
 0x1cd   : > { %v794_v4 = vadd.f32 %v730_v50, %v3475_v21  ;;  %4030 = vst [vmem:[#allocation15_spill] sm:$0xff] %v3517_v35  ;;  %v360_v50 = vld [vmem:[%s2759_s29 + $0x168] sm:$0xff]  ;;  %2393 = vmatmul.msk.f32.gmra.mxu3 %vm417_vm1, %v2480_v51  ;;  %v361_v51 = vld [vmem:[%s2759_s29 + $0x170] sm:$0xff] }
 0x1ce   : > { %v1327_v15 = vpop.f32.mrf.mxu0  ;;  %1915 = vst [vmem:[%s3166_s7 + $0x160] sm:$0xff] %v778_v5  ;;  %v328_v5 = vld [vmem:[%s2759_s29 + $0x68] sm:$0xff] }
 0x1cf   : > { %1979 = vst [vmem:[%s3166_s7 + $0x360] sm:$0xff] %v794_v4  ;;  %1375 = vxpose.xlu0.b32.start [1/16] %v3373_v14, 128  ;;  %v3522_v14 = vld [vmem:[%s3996_s1 + $0x60] sm:$0xff]  ;;  %v344_v4 = vld [vmem:[%s2759_s29 + $0xe8] sm:$0xff] }
 0x1d0   : > { %1407 = vxpose.xlu1.b32.start [1/16] %v3375_v57, 128  ;;  %1102 = vxpose.xlu2.b32.end [16/16] %v1020_v6, 128  ;;  %v3539_v6 = vadd.f32 %v3135_v56, %v360_v50 }
 0x1d1   : > { %2383 = vmatmul.msk.f32.gmra.mxu2 %vm417_vm1, %v3522_v14  ;;  %v763_v57 = vpop.trf.xlu2 }
 0x1d2   : > { %v811_v44 = vadd.f32 %v763_v57, %v3504_v8  ;;  %4031 = vst [vmem:[#allocation16_spill] sm:$0xff] %v3539_v6  ;;  %v3544_v36 = vpop.f32.mrf.mxu2 }
 0x1d3   : > { %v699_v49 = vpop.trf.xlu0 }
 0x1d4   : > { %v731_v31 = vpop.trf.xlu1  ;;  %2047 = vst [vmem:[%s3166_s7 + $0x580] sm:$0xff] %v811_v44  ;;  %v779_v0 = vadd.f32 %v699_v49, %v3517_v35  ;;  %v3546_v57 = vpop.f32.mrf.mxu3  ;;  %v3549_v44 = vadd.f32 %v3135_v56, %v344_v4  ;;  %v3574_v35 = vadd.f32 %v3135_v56, %v361_v51 }
 0x1d5   : > { %v795_v33 = vadd.f32 %v731_v31, %v3514_v38  ;;  %v3552_v31 = vadd.f32 %v3135_v56, %v328_v5  ;;  %v345_v5 = vld [vmem:[%s2759_s29 + $0xf0] sm:$0xff] }
 0x1d6   : > { %v1330_v25 = vpop.f32.mrf.mxu0  ;;  %1919 = vst [vmem:[%s3166_s7 + $0x180] sm:$0xff] %v779_v0  ;;  %v329_v38 = vld [vmem:[%s2759_s29 + $0x70] sm:$0xff] }
 0x1d7   : > { %1983 = vst [vmem:[%s3166_s7 + $0x380] sm:$0xff] %v795_v33  ;;  %1376 = vxpose.xlu0.b32.cont [2/16] %v3404_v32, 128  ;;  %v3557_v32 = vld [vmem:[%s3996_s1 + $0x68] sm:$0xff]  ;;  %v2482_v33 = vld [vmem:[%s3996_s1 + $0x30] sm:$0xff] }
 0x1d8   : > { %1408 = vxpose.xlu1.b32.cont [2/16] %v3406_v18, 128  ;;  %1439 = vxpose.xlu2.b32.start [1/16] %v1327_v15, 128  ;;  %4032 = vst [vmem:[#allocation17_spill] sm:$0xff] %v3549_v44 }
 0x1d9   : > { %4033 = vst [vmem:[#allocation18_spill] sm:$0xff] %v3552_v31  ;;  %2384 = vmatmul.msk.f32.gmra.mxu2 %vm417_vm1, %v3557_v32  ;;  %v764_v18 = vpop.trf.xlu2  ;;  %2394 = vmatmul.msk.f32.gmra.mxu3 %vm417_vm1, %v2482_v33 }
 0x1da   : > { %v812_v15 = vadd.f32 %v764_v18, %v3539_v6  ;;  %4034 = vst [vmem:[#allocation19_spill] sm:$0xff] %v3574_v35  ;;  %v3579_v33 = vpop.f32.mrf.mxu2  ;;  %v330_v6 = vld [vmem:[%s2759_s29 + $0x78] sm:$0xff] }
 0x1db   : > { %v700_v50 = vpop.trf.xlu0 }
 0x1dc   : > { %v732_v49 = vpop.trf.xlu1  ;;  %2051 = vst [vmem:[%s3166_s7 + $0x5a0] sm:$0xff] %v812_v15  ;;  %v780_v4 = vadd.f32 %v700_v50, %v3552_v31  ;;  %v3581_v15 = vpop.f32.mrf.mxu3  ;;  %v3587_v50 = vadd.f32 %v3135_v56, %v329_v38  ;;  %v2484_v38 = vld [vmem:[%s3996_s1 + $0x38] sm:$0xff] }
 0x1dd   : > { %v796_v0 = vadd.f32 %v732_v49, %v3549_v44  ;;  %v3584_v49 = vadd.f32 %v3135_v56, %v345_v5  ;;  %v346_v31 = vld [vmem:[%s2759_s29 + $0xf8] sm:$0xff] }
 0x1de   : > { %v1333_v18 = vpop.f32.mrf.mxu0  ;;  %1923 = vst [vmem:[%s3166_s7 + $0x1a0] sm:$0xff] %v780_v4  ;;  %v362_v4 = vld [vmem:[%s2759_s29 + $0x178] sm:$0xff] }
 0x1df   : > { %1987 = vst [vmem:[%s3166_s7 + $0x3a0] sm:$0xff] %v796_v0  ;;  %1377 = vxpose.xlu0.b32.cont [3/16] %v3437_v28, 128  ;;  %v3592_v28 = vld [vmem:[%s3996_s1 + $0x70] sm:$0xff]  ;;  %v3609_v8 = vadd.f32 %v3135_v56, %v362_v4 }
 0x1e0   : > { %1409 = vxpose.xlu1.b32.cont [3/16] %v3439_v24, 128  ;;  %1440 = vxpose.xlu2.b32.cont [2/16] %v1330_v25, 128 }
 0x1e1   : > { %2385 = vmatmul.msk.f32.gmra.mxu2 %vm417_vm1, %v3592_v28  ;;  %v765_v24 = vpop.trf.xlu2  ;;  %2395 = vmatmul.msk.f32.gmra.mxu3 %vm417_vm1, %v2484_v38 }
 0x1e2   : > { %v813_v25 = vadd.f32 %v765_v24, %v3574_v35  ;;  %v3614_v35 = vpop.f32.mrf.mxu2 }
 0x1e3   : > { %v701_v0 = vpop.trf.xlu0 }
 0x1e4   : > { %v733_v51 = vpop.trf.xlu1  ;;  %2055 = vst [vmem:[%s3166_s7 + $0x5c0] sm:$0xff] %v813_v25  ;;  %v781_v44 = vadd.f32 %v701_v0, %v3587_v50  ;;  %v3616_v25 = vpop.f32.mrf.mxu3  ;;  %v3622_v0 = vadd.f32 %v3135_v56, %v330_v6 }
 0x1e5   : > { %v797_v5 = vadd.f32 %v733_v51, %v3584_v49  ;;  %v3619_v51 = vadd.f32 %v3135_v56, %v346_v31  ;;  %v2486_v31 = vld [vmem:[%s3996_s1 + $0x40] sm:$0xff] }
 0x1e6   : > { %v1336_v24 = vpop.f32.mrf.mxu0  ;;  %1927 = vst [vmem:[%s3166_s7 + $0x1c0] sm:$0xff] %v781_v44  ;;  %v3627_v44 = vld [vmem:[%s3996_s1 + $0x78] sm:$0xff] }
 0x1e7   : > { %1991 = vst [vmem:[%s3166_s7 + $0x3c0] sm:$0xff] %v797_v5  ;;  %1378 = vxpose.xlu0.b32.cont [4/16] %v3470_v41, 128 }
 0x1e8   : > { %1410 = vxpose.xlu1.b32.cont [4/16] %v3472_v47, 128  ;;  %1441 = vxpose.xlu2.b32.cont [3/16] %v1333_v18, 128  ;;  %4035 = vst [vmem:[#allocation20_spill] sm:$0xff] %v3619_v51 }
 0x1e9   : > { %2386 = vmatmul.msk.f32.gmra.mxu2 %vm417_vm1, %v3627_v44  ;;  %v766_v41 = vpop.trf.xlu2  ;;  %2396 = vmatmul.msk.f32.gmra.mxu3 %vm417_vm1, %v2486_v31 }
 0x1ea   : > { %v814_v47 = vadd.f32 %v766_v41, %v3609_v8  ;;  %v3643_v5 = vpop.f32.mrf.mxu2 }
 0x1eb   : > { %v702_v18 = vpop.trf.xlu0 }
 0x1ec   : > { %v734_v4 = vpop.trf.xlu1  ;;  %2059 = vst [vmem:[%s3166_s7 + $0x5e0] sm:$0xff] %v814_v47  ;;  %v782_v6 = vadd.f32 %v702_v18, %v3622_v0  ;;  %v3645_v41 = vpop.f32.mrf.mxu3  ;;  %v2487_v18 = vld [vmem:[%s3996_s1 + $0x48] sm:$0xff] }
 0x1ed   : > { %v798_v56 = vadd.f32 %v734_v4, %v3619_v51 }
 0x1ee   : > { %v1339_v38 = vpop.f32.mrf.mxu0  ;;  %1931 = vst [vmem:[%s3166_s7 + $0x1e0] sm:$0xff] %v782_v6 }
 0x1ef   : > { %1995 = vst [vmem:[%s3166_s7 + $0x3e0] sm:$0xff] %v798_v56  ;;  %1379 = vxpose.xlu0.b32.cont [5/16] %v3509_v27, 128 }
 0x1f0   : > { %1411 = vxpose.xlu1.b32.cont [5/16] %v3511_v62, 128  ;;  %1442 = vxpose.xlu2.b32.cont [4/16] %v1336_v24, 128 }
 0x1f1   : > { %v1103_v47 = vpop.trf.xlu2  ;;  %2397 = vmatmul.msk.f32.gmra.mxu3 %vm417_vm1, %v2487_v18 }
 0x1f2   : > { %v1151_v4 = vadd.f32 %v1103_v47, %v3146_v60  ;;  %v1224_v24 = vpop.f32.mrf.mxu2 }
 0x1f3   : > { %v1039_v31 = vpop.trf.xlu0 }
 0x1f4   : > { %v1071_v51 = vpop.trf.xlu1  ;;  %2000 = vst [vmem:[%s3166_s7 + $0x408] sm:$0xff] %v1151_v4  ;;  %v1119_v27 = vadd.f32 %v1039_v31, %v3154_v20  ;;  %v1289_v6 = vpop.f32.mrf.mxu3 }
 0x1f5   : > { %v1135_v62 = vadd.f32 %v1071_v51, %v3151_v63  ;;  %v2488_v51 = vld [vmem:[%s3996_s1 + $0x50] sm:$0xff] }
 0x1f6   : > { %1872 = vst [vmem:[%s3166_s7 + $0x8] sm:$0xff] %v1119_v27  ;;  %v1342_v56 = vpop.f32.mrf.mxu0 }
 0x1f7   : > { %1936 = vst [vmem:[%s3166_s7 + $0x208] sm:$0xff] %v1135_v62  ;;  %1380 = vxpose.xlu0.b32.cont [6/16] %v3544_v36, 128 }
 0x1f8   : > { %1412 = vxpose.xlu1.b32.cont [6/16] %v3546_v57, 128  ;;  %1443 = vxpose.xlu2.b32.cont [5/16] %v1339_v38, 128 }
 0x1f9   : > { %v1104_v47 = vpop.trf.xlu2  ;;  %2398 = vmatmul.msk.f32.gmra.mxu3 %vm417_vm1, %v2488_v51 }
 0x1fa   : > { %v1152_v4 = vadd.f32 %v1104_v47, %v3175_v10  ;;  %v1227_v27 = vpop.f32.mrf.mxu2 }
 0x1fb   : > { %v1040_v18 = vpop.trf.xlu0 }
 0x1fc   : > { %v1072_v31 = vpop.trf.xlu1  ;;  %2004 = vst [vmem:[%s3166_s7 + $0x428] sm:$0xff] %v1152_v4  ;;  %v1120_v36 = vadd.f32 %v1040_v18, %v3184_v13  ;;  %v1292_v62 = vpop.f32.mrf.mxu3 }
 0x1fd   : > { %v1136_v57 = vadd.f32 %v1072_v31, %v3181_v12 }
 0x1fe   : > { %1876 = vst [vmem:[%s3166_s7 + $0x28] sm:$0xff] %v1120_v36  ;;  %v1345_v38 = vpop.f32.mrf.mxu0 }
 0x1ff   : > { %1940 = vst [vmem:[%s3166_s7 + $0x228] sm:$0xff] %v1136_v57  ;;  %1381 = vxpose.xlu0.b32.cont [7/16] %v3579_v33, 128 }
 0x200   : > { %1413 = vxpose.xlu1.b32.cont [7/16] %v3581_v15, 128  ;;  %1444 = vxpose.xlu2.b32.cont [6/16] %v1342_v56, 128 }
 0x201   : > { %v1105_v47 = vpop.trf.xlu2  ;;  %2399 = vmatmul.msk.f32.gmra.mxu3 %vm417_vm1, %v3483_v26 }
 0x202   : > { %v1153_v4 = vadd.f32 %v1105_v47, %v3203_v40  ;;  %v1230_v15 = vpop.f32.mrf.mxu2 }
 0x203   : > { %v1041_v51 = vpop.trf.xlu0 }
 0x204   : > { %v1073_v10 = vpop.trf.xlu1  ;;  %2008 = vst [vmem:[%s3166_s7 + $0x448] sm:$0xff] %v1153_v4  ;;  %v1121_v18 = vadd.f32 %v1041_v51, %v3213_v43  ;;  %v1295_v56 = vpop.f32.mrf.mxu3 }
 0x205   : > { %v1137_v31 = vadd.f32 %v1073_v10, %v3210_v42 }
 0x206   : > { %1880 = vst [vmem:[%s3166_s7 + $0x48] sm:$0xff] %v1121_v18  ;;  %v1348_v33 = vpop.f32.mrf.mxu0 }
 0x207   : > { %1944 = vst [vmem:[%s3166_s7 + $0x248] sm:$0xff] %v1137_v31  ;;  %1382 = vxpose.xlu0.b32.cont [8/16] %v3614_v35, 128 }
 0x208   : > { %1414 = vxpose.xlu1.b32.cont [8/16] %v3616_v25, 128  ;;  %1445 = vxpose.xlu2.b32.cont [7/16] %v1345_v38, 128 }
 0x209   : > { %v1106_v36 = vpop.trf.xlu2  ;;  %2400 = vmatmul.msk.f32.gmra.mxu3 %vm417_vm1, %v3522_v14 }
 0x20a   : > { %v1154_v26 = vadd.f32 %v1106_v36, %v3232_v54  ;;  %v1233_v25 = vpop.f32.mrf.mxu2 }
 0x20b   : > { %v1042_v57 = vpop.trf.xlu0 }
 0x20c   : > { %v1074_v47 = vpop.trf.xlu1  ;;  %2012 = vst [vmem:[%s3166_s7 + $0x468] sm:$0xff] %v1154_v26  ;;  %v1122_v10 = vadd.f32 %v1042_v57, %v3242_v58  ;;  %v1298_v51 = vpop.f32.mrf.mxu3 }
 0x20d   : > { %v1138_v4 = vadd.f32 %v1074_v47, %v3239_v19 }
 0x20e   : > { %1884 = vst [vmem:[%s3166_s7 + $0x68] sm:$0xff] %v1122_v10  ;;  %v1351_v35 = vpop.f32.mrf.mxu0 }
 0x20f   : > { %1948 = vst [vmem:[%s3166_s7 + $0x268] sm:$0xff] %v1138_v4  ;;  %1383 = vxpose.xlu0.b32.cont [9/16] %v3643_v5, 128 }
 0x210   : > { %1415 = vxpose.xlu1.b32.cont [9/16] %v3645_v41, 128  ;;  %1446 = vxpose.xlu2.b32.cont [8/16] %v1348_v33, 128 }
 0x211   : > { %v1107_v38 = vpop.trf.xlu2  ;;  %2401 = vmatmul.msk.f32.gmra.mxu3 %vm417_vm1, %v3557_v32 }
 0x212   : > { %v1155_v14 = vadd.f32 %v1107_v38, %v3261_v7  ;;  %v1236_v41 = vpop.f32.mrf.mxu2 }
 0x213   : > { %v1043_v18 = vpop.trf.xlu0 }
 0x214   : > { %v1075_v31 = vpop.trf.xlu1  ;;  %2016 = vst [vmem:[%s3166_s7 + $0x488] sm:$0xff] %v1155_v14  ;;  %v1123_v36 = vadd.f32 %v1043_v18, %v3271_v11  ;;  %v1301_v38 = vpop.f32.mrf.mxu3 }
 0x215   : > { %v1139_v26 = vadd.f32 %v1075_v31, %v3268_v9 }
 0x216   : > { %1888 = vst [vmem:[%s3166_s7 + $0x88] sm:$0xff] %v1123_v36  ;;  %v1354_v5 = vpop.f32.mrf.mxu0 }
 0x217   : > { %1952 = vst [vmem:[%s3166_s7 + $0x288] sm:$0xff] %v1139_v26  ;;  %1384 = vxpose.xlu0.b32.cont [10/16] %v1224_v24, 128 }
 0x218   : > { %1416 = vxpose.xlu1.b32.cont [10/16] %v1289_v6, 128  ;;  %1447 = vxpose.xlu2.b32.cont [9/16] %v1351_v35, 128 }
 0x219   : > { %v1108_v33 = vpop.trf.xlu2  ;;  %2402 = vmatmul.msk.f32.gmra.mxu3 %vm417_vm1, %v3592_v28 }
 0x21a   : > { %v1156_v57 = vadd.f32 %v1108_v33, %v3288_v39  ;;  %v1239_v6 = vpop.f32.mrf.mxu2 }
 0x21b   : > { %v1044_v47 = vpop.trf.xlu0 }
 0x21c   : > { %v1076_v32 = vpop.trf.xlu1  ;;  %2020 = vst [vmem:[%s3166_s7 + $0x4a8] sm:$0xff] %v1156_v57  ;;  %v1124_v10 = vadd.f32 %v1044_v47, %v3298_v46 }
 0x21d   : > { %v1140_v4 = vadd.f32 %v1076_v32, %v3295_v45 }
 0x21e   : > { %1892 = vst [vmem:[%s3166_s7 + $0xa8] sm:$0xff] %v1124_v10  ;;  %v1357_v24 = vpop.f32.mrf.mxu0 }
 0x21f   : > { %1956 = vst [vmem:[%s3166_s7 + $0x2a8] sm:$0xff] %v1140_v4  ;;  %1385 = vxpose.xlu0.b32.cont [11/16] %v1227_v27, 128 }
 0x220   : > { %1417 = vxpose.xlu1.b32.cont [11/16] %v1292_v62, 128  ;;  %1448 = vxpose.xlu2.b32.cont [10/16] %v1354_v5, 128  ;;  %v1304_v62 = vpop.f32.mrf.mxu3 }
 0x221   : > { %v1109_v35 = vpop.trf.xlu2  ;;  %2403 = vmatmul.msk.f32.gmra.mxu3 %vm417_vm1, %v3627_v44 }
 0x222   : > { %v1157_v14 = vadd.f32 %v1109_v35, %v3315_v55  ;;  %v1242_v26 = vpop.f32.mrf.mxu2 }
 0x223   : > { %v1045_v28 = vpop.trf.xlu0 }
 0x224   : > { %v1077_v18 = vpop.trf.xlu1  ;;  %2024 = vst [vmem:[%s3166_s7 + $0x4c8] sm:$0xff] %v1157_v14  ;;  %v1125_v31 = vadd.f32 %v1045_v28, %v3325_v2 }
 0x225   : > { %v1141_v36 = vadd.f32 %v1077_v18, %v3322_v1 }
 0x226   : > { %1896 = vst [vmem:[%s3166_s7 + $0xc8] sm:$0xff] %v1125_v31  ;;  %v1360_v27 = vpop.f32.mrf.mxu0 }
 0x227   : > { %1960 = vst [vmem:[%s3166_s7 + $0x2c8] sm:$0xff] %v1141_v36  ;;  %1386 = vxpose.xlu0.b32.cont [12/16] %v1230_v15, 128  ;;  %v1549_v15 = vpop.f32.mrf.mxu1 }
 0x228   : > { %1418 = vxpose.xlu1.b32.cont [12/16] %v1295_v56, 128  ;;  %1449 = vxpose.xlu2.b32.cont [11/16] %v1357_v24, 128  ;;  %v1307_v4 = vpop.f32.mrf.mxu3 }
 0x229   : > { %v1110_v5 = vpop.trf.xlu2 }
 0x22a   : > { %v1158_v33 = vadd.f32 %v1110_v5, %v3342_v29  ;;  %v1614_v56 = vpop.f32.mrf.mxu2 }
 0x22b   : > { %v1046_v44 = vpop.trf.xlu0 }
 0x22c   : > { %v1078_v57 = vpop.trf.xlu1  ;;  %2028 = vst [vmem:[%s3166_s7 + $0x4e8] sm:$0xff] %v1158_v33  ;;  %v1126_v47 = vadd.f32 %v1046_v44, %v3352_v37 }
 0x22d   : > { %v1142_v32 = vadd.f32 %v1078_v57, %v3349_v34 }
 0x22e   : > { %1900 = vst [vmem:[%s3166_s7 + $0xe8] sm:$0xff] %v1126_v47  ;;  %v1363_v10 = vpop.f32.mrf.mxu0 }
 0x22f   : > { %1964 = vst [vmem:[%s3166_s7 + $0x2e8] sm:$0xff] %v1142_v32  ;;  %1387 = vxpose.xlu0.b32.cont [13/16] %v1233_v25, 128 }
 0x230   : > { %1419 = vxpose.xlu1.b32.cont [13/16] %v1298_v51, 128  ;;  %1450 = vxpose.xlu2.b32.cont [12/16] %v1360_v27, 128  ;;  %v1552_v51 = vpop.f32.mrf.mxu1  ;;  %v1679_v27 = vpop.f32.mrf.mxu3 }
 0x231   : > { %v1111_v24 = vpop.trf.xlu2 }
 0x232   : > { %v1159_v35 = vadd.f32 %v1111_v24, %v3369_v53  ;;  %v1617_v36 = vpop.f32.mrf.mxu2 }
 0x233   : > { %v1047_v14 = vpop.trf.xlu0 }
 0x234   : > { %v1079_v28 = vpop.trf.xlu1  ;;  %2032 = vst [vmem:[%s3166_s7 + $0x508] sm:$0xff] %v1159_v35  ;;  %v1127_v18 = vadd.f32 %v1047_v14, %v3381_v61 }
 0x235   : > { %v1143_v31 = vadd.f32 %v1079_v28, %v3378_v59 }
 0x236   : > { %1904 = vst [vmem:[%s3166_s7 + $0x108] sm:$0xff] %v1127_v18  ;;  %v1366_v25 = vpop.f32.mrf.mxu0 }
 0x237   : > { %1968 = vst [vmem:[%s3166_s7 + $0x308] sm:$0xff] %v1143_v31  ;;  %1388 = vxpose.xlu0.b32.cont [14/16] %v1236_v41, 128 }
 0x238   : > { %1420 = vxpose.xlu1.b32.cont [14/16] %v1301_v38, 128  ;;  %1451 = vxpose.xlu2.b32.cont [13/16] %v1363_v10, 128  ;;  %v1682_v41 = vpop.f32.mrf.mxu3  ;;  %v1555_v35 = vpop.f32.mrf.mxu1 }
 0x239   : > { %v1112_v5 = vpop.trf.xlu2 }
 0x23a   : > { %v1160_v33 = vadd.f32 %v1112_v5, %v3400_v16  ;;  %v1620_v14 = vpop.f32.mrf.mxu2 }
 0x23b   : > { %v1048_v44 = vpop.trf.xlu0 }
 0x23c   : > { %v1080_v57 = vpop.trf.xlu1  ;;  %2036 = vst [vmem:[%s3166_s7 + $0x528] sm:$0xff] %v1160_v33  ;;  %v1128_v47 = vadd.f32 %v1048_v44, %v3412_v30 }
 0x23d   : > { %v1144_v32 = vadd.f32 %v1080_v57, %v3409_v17 }
 0x23e   : > { %1908 = vst [vmem:[%s3166_s7 + $0x128] sm:$0xff] %v1128_v47  ;;  %v1369_v10 = vpop.f32.mrf.mxu0 }
 0x23f   : > { %1972 = vst [vmem:[%s3166_s7 + $0x328] sm:$0xff] %v1144_v32  ;;  %1389 = vxpose.xlu0.b32.cont [15/16] %v1239_v6, 128 }
 0x240   : > { %1421 = vxpose.xlu1.b32.cont [15/16] %v1304_v62, 128  ;;  %1452 = vxpose.xlu2.b32.cont [14/16] %v1366_v25, 128  ;;  %v1685_v25 = vpop.f32.mrf.mxu3  ;;  %v1558_v32 = vpop.f32.mrf.mxu1 }
 0x241   : > { %v1113_v38 = vpop.trf.xlu2 }
 0x242   : > { %v1161_v24 = vadd.f32 %v1113_v38, %v3433_v52  ;;  %v1623_v38 = vpop.f32.mrf.mxu2 }
 0x243   : > { %v1049_v28 = vpop.trf.xlu0 }
 0x244   : > { %v1081_v18 = vpop.trf.xlu1  ;;  %2040 = vst [vmem:[%s3166_s7 + $0x548] sm:$0xff] %v1161_v24  ;;  %v1129_v31 = vadd.f32 %v1049_v28, %v3445_v22 }
 0x245   : > { %v1145_v5 = vadd.f32 %v1081_v18, %v3442_v3 }
 0x246   : > { %1912 = vst [vmem:[%s3166_s7 + $0x148] sm:$0xff] %v1129_v31  ;;  %v1372_v24 = vpop.f32.mrf.mxu0  ;;  %v4037_v31 = vld [vmem:[#allocation15_spill] sm:$0xff] }
 0x247   : > { %1976 = vst [vmem:[%s3166_s7 + $0x348] sm:$0xff] %v1145_v5  ;;  %1390 = vxpose.xlu0.b32.end [16/16] %v1242_v26, 128 }
 0x248   : > { %1422 = vxpose.xlu1.b32.end [16/16] %v1307_v4, 128  ;;  %1453 = vxpose.xlu2.b32.cont [15/16] %v1369_v10, 128  ;;  %v4036_v4 = vld [vmem:[#allocation13_spill] sm:$0xff] }
 0x249   : > { %v1114_v6 = vpop.trf.xlu2 }
 0x24a   : > { %v1162_v62 = vadd.f32 %v1114_v6, %v3466_v23  ;;  %v4038_v6 = vld [vmem:[#allocation14_spill] sm:$0xff] }
 0x24b   : > { %v1050_v33 = vpop.trf.xlu0 }
 0x24c   : > { %v1082_v44 = vpop.trf.xlu1  ;;  %2044 = vst [vmem:[%s3166_s7 + $0x568] sm:$0xff] %v1162_v62  ;;  %v1130_v57 = vadd.f32 %v1050_v33, %v3478_v48  ;;  %v1688_v33 = vpop.f32.mrf.mxu3 }
 0x24d   : > { %v1146_v47 = vadd.f32 %v1082_v44, %v3475_v21  ;;  %v1561_v44 = vpop.f32.mrf.mxu1 }
 0x24e   : > { %1916 = vst [vmem:[%s3166_s7 + $0x168] sm:$0xff] %v1130_v57  ;;  %v1626_v57 = vpop.f32.mrf.mxu2 }
 0x24f   : > { %1980 = vst [vmem:[%s3166_s7 + $0x368] sm:$0xff] %v1146_v47  ;;  %1727 = vxpose.xlu0.b32.start [1/16] %v1549_v15, 128 }
 0x250   : > { %1759 = vxpose.xlu1.b32.start [1/16] %v1614_v56, 128  ;;  %1454 = vxpose.xlu2.b32.end [16/16] %v1372_v24, 128  ;;  %v4039_v56 = vld [vmem:[#allocation16_spill] sm:$0xff] }
 0x251   : > { %v1115_v26 = vpop.trf.xlu2 }
 0x252   : > { %v1163_v10 = vadd.f32 %v1115_v26, %v4036_v4 }
 0x253   : > { %v1051_v28 = vpop.trf.xlu0 }
 0x254   : > { %v1083_v18 = vpop.trf.xlu1  ;;  %2048 = vst [vmem:[%s3166_s7 + $0x588] sm:$0xff] %v1163_v10  ;;  %v1131_v5 = vadd.f32 %v1051_v28, %v4037_v31  ;;  %v4040_v10 = vld [vmem:[#allocation18_spill] sm:$0xff] }
 0x255   : > { %v1147_v62 = vadd.f32 %v1083_v18, %v4038_v6  ;;  %v4041_v18 = vld [vmem:[#allocation17_spill] sm:$0xff] }
 0x256   : > { %1920 = vst [vmem:[%s3166_s7 + $0x188] sm:$0xff] %v1131_v5  ;;  %v1691_v5 = vpop.f32.mrf.mxu3 }
 0x257   : > { %1984 = vst [vmem:[%s3166_s7 + $0x388] sm:$0xff] %v1147_v62  ;;  %1728 = vxpose.xlu0.b32.cont [2/16] %v1552_v51, 128  ;;  %v1564_v51 = vpop.f32.mrf.mxu1  ;;  %v4042_v62 = vld [vmem:[#allocation19_spill] sm:$0xff] }
 0x258   : > { %1760 = vxpose.xlu1.b32.cont [2/16] %v1617_v36, 128  ;;  %1791 = vxpose.xlu2.b32.start [1/16] %v1679_v27, 128  ;;  %v1629_v36 = vpop.f32.mrf.mxu2 }
 0x259   : > { %v1116_v15 = vpop.trf.xlu2 }
 0x25a   : > { %v1164_v47 = vadd.f32 %v1116_v15, %v4039_v56 }
 0x25b   : > { %v1052_v24 = vpop.trf.xlu0 }
 0x25c   : > { %v1084_v26 = vpop.trf.xlu1  ;;  %2052 = vst [vmem:[%s3166_s7 + $0x5a8] sm:$0xff] %v1164_v47  ;;  %v1132_v28 = vadd.f32 %v1052_v24, %v4040_v10 }
 0x25d   : > { %v1148_v6 = vadd.f32 %v1084_v26, %v4041_v18 }
 0x25e   : > { %1924 = vst [vmem:[%s3166_s7 + $0x1a8] sm:$0xff] %v1132_v28 }
 0x25f   : > { %1988 = vst [vmem:[%s3166_s7 + $0x3a8] sm:$0xff] %v1148_v6  ;;  %1729 = vxpose.xlu0.b32.cont [3/16] %v1555_v35, 128  ;;  %v1567_v6 = vpop.f32.mrf.mxu1 }
 0x260   : > { %1761 = vxpose.xlu1.b32.cont [3/16] %v1620_v14, 128  ;;  %1792 = vxpose.xlu2.b32.cont [2/16] %v1682_v41, 128  ;;  %v1694_v41 = vpop.f32.mrf.mxu3  ;;  %v1632_v26 = vpop.f32.mrf.mxu2 }
 0x261   : > { %v1117_v27 = vpop.trf.xlu2 }
 0x262   : > { %v1165_v15 = vadd.f32 %v1117_v27, %v4042_v62 }
 0x263   : > { %v1053_v56 = vpop.trf.xlu0 }
 0x264   : > { %v1085_v31 = vpop.trf.xlu1  ;;  %2056 = vst [vmem:[%s3166_s7 + $0x5c8] sm:$0xff] %v1165_v15  ;;  %v1133_v47 = vadd.f32 %v1053_v56, %v3587_v50 }
 0x265   : > { %v1149_v24 = vadd.f32 %v1085_v31, %v3584_v49  ;;  %v4043_v31 = vld [vmem:[#allocation20_spill] sm:$0xff] }
 0x266   : > { %1928 = vst [vmem:[%s3166_s7 + $0x1c8] sm:$0xff] %v1133_v47 }
 0x267   : > { %1992 = vst [vmem:[%s3166_s7 + $0x3c8] sm:$0xff] %v1149_v24  ;;  %1730 = vxpose.xlu0.b32.cont [4/16] %v1558_v32, 128 }
 0x268   : > { %1762 = vxpose.xlu1.b32.cont [4/16] %v1623_v38, 128  ;;  %1793 = vxpose.xlu2.b32.cont [3/16] %v1685_v25, 128  ;;  %v1697_v38 = vpop.f32.mrf.mxu3 }
 0x269   : > { %v1118_v35 = vpop.trf.xlu2 }
 0x26a   : > { %v1166_v14 = vadd.f32 %v1118_v35, %v3609_v8 }
 0x26b   : > { %v1054_v28 = vpop.trf.xlu0 }
 0x26c   : > { %v1086_v27 = vpop.trf.xlu1  ;;  %2060 = vst [vmem:[%s3166_s7 + $0x5e8] sm:$0xff] %v1166_v14  ;;  %v1134_v56 = vadd.f32 %v1054_v28, %v3622_v0  ;;  %v1570_v28 = vpop.f32.mrf.mxu1 }
 0x26d   : > { %v1150_v15 = vadd.f32 %v1086_v27, %v4043_v31  ;;  %v1635_v27 = vpop.f32.mrf.mxu2 }
 0x26e   : > { %1932 = vst [vmem:[%s3166_s7 + $0x1e8] sm:$0xff] %v1134_v56 }
 0x26f   : > { %1996 = vst [vmem:[%s3166_s7 + $0x3e8] sm:$0xff] %v1150_v15  ;;  %1731 = vxpose.xlu0.b32.cont [5/16] %v1561_v44, 128  ;;  %v4044_v44 = vld [vmem:[#allocation12_spill] sm:$0xff] }
 0x270   : > { %1763 = vxpose.xlu1.b32.cont [5/16] %v1626_v57, 128  ;;  %1794 = vxpose.xlu2.b32.cont [4/16] %v1688_v33, 128 }
 0x271   : > { %v1455_v25 = vpop.trf.xlu2 }
 0x272   : > { %v1503_v32 = vadd.f32 %v1455_v25, %v3146_v60 }
 0x273   : > { %v1391_v47 = vpop.trf.xlu0 }
 0x274   : > { %v1423_v24 = vpop.trf.xlu1  ;;  %v1471_v35 = vadd.f32 %v1391_v47, %v3154_v20  ;;  %2001 = vst [vmem:[%s3166_s7 + $0x410] sm:$0xff] %v1503_v32  ;;  %v1700_v32 = vpop.f32.mrf.mxu3 }
 0x275   : > { %v1487_v14 = vadd.f32 %v1423_v24, %v3151_v63  ;;  %v1573_v24 = vpop.f32.mrf.mxu1 }
 0x276   : > { %1873 = vst [vmem:[%s3166_s7 + $0x10] sm:$0xff] %v1471_v35  ;;  %v1638_v35 = vpop.f32.mrf.mxu2 }
 0x277   : > { %1937 = vst [vmem:[%s3166_s7 + $0x210] sm:$0xff] %v1487_v14  ;;  %1732 = vxpose.xlu0.b32.cont [6/16] %v1564_v51, 128 }
 0x278   : > { %1764 = vxpose.xlu1.b32.cont [6/16] %v1629_v36, 128  ;;  %1795 = vxpose.xlu2.b32.cont [5/16] %v1691_v5, 128 }
 0x279   : > { %v1456_v33 = vpop.trf.xlu2 }
 0x27a   : > { %v1504_v57 = vadd.f32 %v1456_v33, %v4044_v44 }
 0x27b   : > { %v1392_v56 = vpop.trf.xlu0 }
 0x27c   : > { %v1424_v15 = vpop.trf.xlu1  ;;  %v1472_v25 = vadd.f32 %v1392_v56, %v3184_v13  ;;  %2005 = vst [vmem:[%s3166_s7 + $0x430] sm:$0xff] %v1504_v57  ;;  %v1703_v57 = vpop.f32.mrf.mxu3 }
 0x27d   : > { %v1488_v47 = vadd.f32 %v1424_v15, %v3181_v12 }
 0x27e   : > { %1877 = vst [vmem:[%s3166_s7 + $0x30] sm:$0xff] %v1472_v25 }
 0x27f   : > { %1941 = vst [vmem:[%s3166_s7 + $0x230] sm:$0xff] %v1488_v47  ;;  %1733 = vxpose.xlu0.b32.cont [7/16] %v1567_v6, 128  ;;  %v1641_v6 = vpop.f32.mrf.mxu2 }
 0x280   : > { %1765 = vxpose.xlu1.b32.cont [7/16] %v1632_v26, 128  ;;  %1796 = vxpose.xlu2.b32.cont [6/16] %v1694_v41, 128  ;;  %v1576_v41 = vpop.f32.mrf.mxu1 }
 0x281   : > { %v1457_v5 = vpop.trf.xlu2 }
 0x282   : > { %v1505_v51 = vadd.f32 %v1457_v5, %v3203_v40 }
 0x283   : > { %v1393_v36 = vpop.trf.xlu0 }
 0x284   : > { %v1425_v14 = vpop.trf.xlu1  ;;  %v1473_v33 = vadd.f32 %v1393_v36, %v3213_v43  ;;  %2009 = vst [vmem:[%s3166_s7 + $0x450] sm:$0xff] %v1505_v51 }
 0x285   : > { %v1489_v56 = vadd.f32 %v1425_v14, %v3210_v42 }
 0x286   : > { %1881 = vst [vmem:[%s3166_s7 + $0x50] sm:$0xff] %v1473_v33 }
 0x287   : > { %1945 = vst [vmem:[%s3166_s7 + $0x250] sm:$0xff] %v1489_v56  ;;  %1734 = vxpose.xlu0.b32.cont [8/16] %v1570_v28, 128  ;;  %v1644_v14 = vpop.f32.mrf.mxu2 }
 0x288   : > { %1766 = vxpose.xlu1.b32.cont [8/16] %v1635_v27, 128  ;;  %1797 = vxpose.xlu2.b32.cont [7/16] %v1697_v38, 128  ;;  %v1706_v38 = vpop.f32.mrf.mxu3  ;;  %v1579_v51 = vpop.f32.mrf.mxu1 }
 0x289   : > { %v1458_v26 = vpop.trf.xlu2 }
 0x28a   : > { %v1506_v15 = vadd.f32 %v1458_v26, %v3232_v54 }
 0x28b   : > { %v1394_v25 = vpop.trf.xlu0 }
 0x28c   : > { %v1426_v47 = vpop.trf.xlu1  ;;  %v1474_v5 = vadd.f32 %v1394_v25, %v3242_v58  ;;  %2013 = vst [vmem:[%s3166_s7 + $0x470] sm:$0xff] %v1506_v15 }
 0x28d   : > { %v1490_v36 = vadd.f32 %v1426_v47, %v3239_v19 }
 0x28e   : > { %1885 = vst [vmem:[%s3166_s7 + $0x70] sm:$0xff] %v1474_v5 }
 0x28f   : > { %1949 = vst [vmem:[%s3166_s7 + $0x270] sm:$0xff] %v1490_v36  ;;  %1735 = vxpose.xlu0.b32.cont [9/16] %v1573_v24, 128 }
 0x290   : > { %1767 = vxpose.xlu1.b32.cont [9/16] %v1638_v35, 128  ;;  %1798 = vxpose.xlu2.b32.cont [8/16] %v1700_v32, 128  ;;  %v1709_v35 = vpop.f32.mrf.mxu3 }
 0x291   : > { %v1459_v28 = vpop.trf.xlu2 }
 0x292   : > { %v1507_v27 = vadd.f32 %v1459_v28, %v3261_v7  ;;  %v1582_v28 = vpop.f32.mrf.mxu1 }
 0x293   : > { %v1395_v33 = vpop.trf.xlu0 }
 0x294   : > { %v1427_v56 = vpop.trf.xlu1  ;;  %v1475_v26 = vadd.f32 %v1395_v33, %v3271_v11  ;;  %2017 = vst [vmem:[%s3166_s7 + $0x490] sm:$0xff] %v1507_v27  ;;  %v1647_v27 = vpop.f32.mrf.mxu2 }
 0x295   : > { %v1491_v15 = vadd.f32 %v1427_v56, %v3268_v9 }
 0x296   : > { %1889 = vst [vmem:[%s3166_s7 + $0x90] sm:$0xff] %v1475_v26 }
 0x297   : > { %1953 = vst [vmem:[%s3166_s7 + $0x290] sm:$0xff] %v1491_v15  ;;  %1736 = vxpose.xlu0.b32.cont [10/16] %v1576_v41, 128 }
 0x298   : > { %1768 = vxpose.xlu1.b32.cont [10/16] %v1641_v6, 128  ;;  %1799 = vxpose.xlu2.b32.cont [9/16] %v1703_v57, 128  ;;  %v1712_v15 = vpop.f32.mrf.mxu3 }
 0x299   : > { %v1460_v32 = vpop.trf.xlu2 }
 0x29a   : > { %v1508_v24 = vadd.f32 %v1460_v32, %v3288_v39  ;;  %v1585_v32 = vpop.f32.mrf.mxu1 }
 0x29b   : > { %v1396_v25 = vpop.trf.xlu0 }
 0x29c   : > { %v1428_v47 = vpop.trf.xlu1  ;;  %v1476_v5 = vadd.f32 %v1396_v25, %v3298_v46  ;;  %2021 = vst [vmem:[%s3166_s7 + $0x4b0] sm:$0xff] %v1508_v24  ;;  %v1650_v24 = vpop.f32.mrf.mxu2 }
 0x29d   : > { %v1492_v36 = vadd.f32 %v1428_v47, %v3295_v45 }
 0x29e   : > { %1893 = vst [vmem:[%s3166_s7 + $0xb0] sm:$0xff] %v1476_v5 }
 0x29f   : > { %1957 = vst [vmem:[%s3166_s7 + $0x2b0] sm:$0xff] %v1492_v36  ;;  %1737 = vxpose.xlu0.b32.cont [11/16] %v1579_v51, 128 }
 0x2a0   : > { %1769 = vxpose.xlu1.b32.cont [11/16] %v1644_v14, 128  ;;  %1800 = vxpose.xlu2.b32.cont [10/16] %v1706_v38, 128  ;;  %v1715_v36 = vpop.f32.mrf.mxu3 }
 0x2a1   : > { %v1461_v57 = vpop.trf.xlu2 }
 0x2a2   : > { %v1509_v41 = vadd.f32 %v1461_v57, %v3315_v55 }
 0x2a3   : > { %v1397_v6 = vpop.trf.xlu0 }
 0x2a4   : > { %v1429_v33 = vpop.trf.xlu1  ;;  %v1477_v56 = vadd.f32 %v1397_v6, %v3325_v2  ;;  %2025 = vst [vmem:[%s3166_s7 + $0x4d0] sm:$0xff] %v1509_v41 }
 0x2a5   : > { %v1493_v26 = vadd.f32 %v1429_v33, %v3322_v1 }
 0x2a6   : > { %1897 = vst [vmem:[%s3166_s7 + $0xd0] sm:$0xff] %v1477_v56 }
 0x2a7   : > { %1961 = vst [vmem:[%s3166_s7 + $0x2d0] sm:$0xff] %v1493_v26  ;;  %1738 = vxpose.xlu0.b32.cont [12/16] %v1582_v28, 128  ;;  %v1653_v28 = vpop.f32.mrf.mxu2 }
 0x2a8   : > { %1770 = vxpose.xlu1.b32.cont [12/16] %v1647_v27, 128  ;;  %1801 = vxpose.xlu2.b32.cont [11/16] %v1709_v35, 128  ;;  %v1588_v35 = vpop.f32.mrf.mxu1  ;;  %v1718_v26 = vpop.f32.mrf.mxu3 }
 0x2a9   : > { %v1462_v38 = vpop.trf.xlu2 }
 0x2aa   : > { %v1510_v51 = vadd.f32 %v1462_v38, %v3342_v29 }
 0x2ab   : > { %v1398_v14 = vpop.trf.xlu0 }
 0x2ac   : > { %v1430_v25 = vpop.trf.xlu1  ;;  %v1478_v47 = vadd.f32 %v1398_v14, %v3352_v37  ;;  %2029 = vst [vmem:[%s3166_s7 + $0x4f0] sm:$0xff] %v1510_v51 }
 0x2ad   : > { %v1494_v5 = vadd.f32 %v1430_v25, %v3349_v34 }
 0x2ae   : > { %1901 = vst [vmem:[%s3166_s7 + $0xf0] sm:$0xff] %v1478_v47 }
 0x2af   : > { %1965 = vst [vmem:[%s3166_s7 + $0x2f0] sm:$0xff] %v1494_v5  ;;  %1739 = vxpose.xlu0.b32.cont [13/16] %v1585_v32, 128  ;;  %v1656_v38 = vpop.f32.mrf.mxu2 }
 0x2b0   : > { %1771 = vxpose.xlu1.b32.cont [13/16] %v1650_v24, 128  ;;  %1802 = vxpose.xlu2.b32.cont [12/16] %v1712_v15, 128  ;;  %v1591_v24 = vpop.f32.mrf.mxu1 }
 0x2b1   : > { %v1463_v27 = vpop.trf.xlu2 }
 0x2b2   : > { %v1511_v57 = vadd.f32 %v1463_v27, %v3369_v53 }
 0x2b3   : > { %v1399_v41 = vpop.trf.xlu0 }
 0x2b4   : > { %v1431_v6 = vpop.trf.xlu1  ;;  %v1479_v33 = vadd.f32 %v1399_v41, %v3381_v61  ;;  %2033 = vst [vmem:[%s3166_s7 + $0x510] sm:$0xff] %v1511_v57 }
 0x2b5   : > { %v1495_v56 = vadd.f32 %v1431_v6, %v3378_v59 }
 0x2b6   : > { %1905 = vst [vmem:[%s3166_s7 + $0x110] sm:$0xff] %v1479_v33 }
 0x2b7   : > { %1969 = vst [vmem:[%s3166_s7 + $0x310] sm:$0xff] %v1495_v56  ;;  %1740 = vxpose.xlu0.b32.cont [14/16] %v1588_v35, 128  ;;  %v1721_v35 = vpop.f32.mrf.mxu3  ;;  %v1659_v33 = vpop.f32.mrf.mxu2 }
 0x2b8   : > { %1772 = vxpose.xlu1.b32.cont [14/16] %v1653_v28, 128  ;;  %1803 = vxpose.xlu2.b32.cont [13/16] %v1715_v36, 128  ;;  %v1594_v6 = vpop.f32.mrf.mxu1 }
 0x2b9   : > { %v1464_v15 = vpop.trf.xlu2 }
 0x2ba   : > { %v1512_v32 = vadd.f32 %v1464_v15, %v3400_v16 }
 0x2bb   : > { %v1400_v51 = vpop.trf.xlu0 }
 0x2bc   : > { %v1432_v14 = vpop.trf.xlu1  ;;  %v1480_v25 = vadd.f32 %v1400_v51, %v3412_v30  ;;  %2037 = vst [vmem:[%s3166_s7 + $0x530] sm:$0xff] %v1512_v32 }
 0x2bd   : > { %v1496_v47 = vadd.f32 %v1432_v14, %v3409_v17 }
 0x2be   : > { %1909 = vst [vmem:[%s3166_s7 + $0x130] sm:$0xff] %v1480_v25 }
 0x2bf   : > { %1973 = vst [vmem:[%s3166_s7 + $0x330] sm:$0xff] %v1496_v47  ;;  %1741 = vxpose.xlu0.b32.cont [15/16] %v1591_v24, 128  ;;  %v1724_v51 = vpop.f32.mrf.mxu3 }
 0x2c0   : > { %1773 = vxpose.xlu1.b32.cont [15/16] %v1656_v38, 128  ;;  %1804 = vxpose.xlu2.b32.cont [14/16] %v1718_v26, 128 }
 0x2c1   : > { %v1465_v5 = vpop.trf.xlu2 }
 0x2c2   : > { %v1513_v36 = vadd.f32 %v1465_v5, %v3433_v52 }
 0x2c3   : > { %v1401_v28 = vpop.trf.xlu0 }
 0x2c4   : > { %v1433_v27 = vpop.trf.xlu1  ;;  %v1481_v57 = vadd.f32 %v1401_v28, %v3445_v22  ;;  %2041 = vst [vmem:[%s3166_s7 + $0x550] sm:$0xff] %v1513_v36  ;;  %v4045_v36 = vld [vmem:[#allocation15_spill] sm:$0xff]  ;;  %v4046_v28 = vld [vmem:[#allocation14_spill] sm:$0xff] }
 0x2c5   : > { %v1497_v41 = vadd.f32 %v1433_v27, %v3442_v3 }
 0x2c6   : > { %1913 = vst [vmem:[%s3166_s7 + $0x150] sm:$0xff] %v1481_v57 }
 0x2c7   : > { %1977 = vst [vmem:[%s3166_s7 + $0x350] sm:$0xff] %v1497_v41  ;;  %1742 = vxpose.xlu0.b32.end [16/16] %v1594_v6, 128  ;;  %v4047_v41 = vld [vmem:[#allocation16_spill] sm:$0xff] }
 0x2c8   : > { %1774 = vxpose.xlu1.b32.end [16/16] %v1659_v33, 128  ;;  %1805 = vxpose.xlu2.b32.cont [15/16] %v1721_v35, 128 }
 0x2c9   : > { %v1466_v56 = vpop.trf.xlu2 }
 0x2ca   : > { %v1514_v26 = vadd.f32 %v1466_v56, %v3466_v23 }
 0x2cb   : > { %v1402_v15 = vpop.trf.xlu0 }
 0x2cc   : > { %v1434_v32 = vpop.trf.xlu1  ;;  %v1482_v24 = vadd.f32 %v1402_v15, %v3478_v48  ;;  %2045 = vst [vmem:[%s3166_s7 + $0x570] sm:$0xff] %v1514_v26 }
 0x2cd   : > { %v1498_v38 = vadd.f32 %v1434_v32, %v3475_v21 }
 0x2ce   : > { %1917 = vst [vmem:[%s3166_s7 + $0x170] sm:$0xff] %v1482_v24 }
 0x2cf   : > { %1981 = vst [vmem:[%s3166_s7 + $0x370] sm:$0xff] %v1498_v38 }
 0x2d0   : > { %1806 = vxpose.xlu2.b32.end [16/16] %v1724_v51, 128 }
 0x2d1   : > { %v1467_v14 = vpop.trf.xlu2 }
 0x2d2   : > { %v1515_v25 = vadd.f32 %v1467_v14, %v4036_v4 }
 0x2d3   : > { %v1403_v47 = vpop.trf.xlu0 }
 0x2d4   : > { %v1435_v5 = vpop.trf.xlu1  ;;  %v1483_v35 = vadd.f32 %v1403_v47, %v4045_v36  ;;  %2049 = vst [vmem:[%s3166_s7 + $0x590] sm:$0xff] %v1515_v25 }
 0x2d5   : > { %v1499_v27 = vadd.f32 %v1435_v5, %v4046_v28 }
 0x2d6   : > { %1921 = vst [vmem:[%s3166_s7 + $0x190] sm:$0xff] %v1483_v35 }
 0x2d7   : > { %1985 = vst [vmem:[%s3166_s7 + $0x390] sm:$0xff] %v1499_v27 }
 0x2d9   : > { %v1468_v57 = vpop.trf.xlu2 }
 0x2da   : > { %v1516_v6 = vadd.f32 %v1468_v57, %v4047_v41 }
 0x2db   : > { %v1404_v33 = vpop.trf.xlu0 }
 0x2dc   : > { %v1436_v56 = vpop.trf.xlu1  ;;  %v1484_v26 = vadd.f32 %v1404_v33, %v4040_v10  ;;  %2053 = vst [vmem:[%s3166_s7 + $0x5b0] sm:$0xff] %v1516_v6 }
 0x2dd   : > { %v1500_v15 = vadd.f32 %v1436_v56, %v4041_v18 }
 0x2de   : > { %1925 = vst [vmem:[%s3166_s7 + $0x1b0] sm:$0xff] %v1484_v26 }
 0x2df   : > { %1989 = vst [vmem:[%s3166_s7 + $0x3b0] sm:$0xff] %v1500_v15 }
 0x2e1   : > { %v1469_v32 = vpop.trf.xlu2 }
 0x2e2   : > { %v1517_v24 = vadd.f32 %v1469_v32, %v4042_v62 }
 0x2e3   : > { %v1405_v38 = vpop.trf.xlu0 }
 0x2e4   : > { %v1437_v51 = vpop.trf.xlu1  ;;  %v1485_v14 = vadd.f32 %v1405_v38, %v3587_v50  ;;  %2057 = vst [vmem:[%s3166_s7 + $0x5d0] sm:$0xff] %v1517_v24 }
 0x2e5   : > { %v1501_v25 = vadd.f32 %v1437_v51, %v3584_v49 }
 0x2e6   : > { %1929 = vst [vmem:[%s3166_s7 + $0x1d0] sm:$0xff] %v1485_v14 }
 0x2e7   : > { %1993 = vst [vmem:[%s3166_s7 + $0x3d0] sm:$0xff] %v1501_v25 }
 0x2e9   : > { %v1470_v47 = vpop.trf.xlu2 }
 0x2ea   : > { %v1518_v5 = vadd.f32 %v1470_v47, %v3609_v8 }
 0x2eb   : > { %v1406_v35 = vpop.trf.xlu0 }
 0x2ec   : > { %v1438_v27 = vpop.trf.xlu1  ;;  %v1486_v57 = vadd.f32 %v1406_v35, %v3622_v0  ;;  %2061 = vst [vmem:[%s3166_s7 + $0x5f0] sm:$0xff] %v1518_v5 }
 0x2ed   : > { %v1502_v6 = vadd.f32 %v1438_v27, %v4043_v31 }
 0x2ee   : > { %1933 = vst [vmem:[%s3166_s7 + $0x1f0] sm:$0xff] %v1486_v57 }
 0x2ef   : > { %1997 = vst [vmem:[%s3166_s7 + $0x3f0] sm:$0xff] %v1502_v6 }
 0x2f1   : > { %v1807_v33 = vpop.trf.xlu2 }
 0x2f2   : > { %v1855_v56 = vadd.f32 %v1807_v33, %v3146_v60 }
 0x2f3   : > { %v1743_v26 = vpop.trf.xlu0 }
 0x2f4   : > { %v1775_v15 = vpop.trf.xlu1  ;;  %v1823_v32 = vadd.f32 %v1743_v26, %v3154_v20  ;;  %2002 = vst [vmem:[%s3166_s7 + $0x418] sm:$0xff] %v1855_v56 }
 0x2f5   : > { %v1839_v24 = vadd.f32 %v1775_v15, %v3151_v63 }
 0x2f6   : > { %1874 = vst [vmem:[%s3166_s7 + $0x18] sm:$0xff] %v1823_v32 }
 0x2f7   : > { %1938 = vst [vmem:[%s3166_s7 + $0x218] sm:$0xff] %v1839_v24 }
 0x2f9   : > { %v1808_v38 = vpop.trf.xlu2 }
 0x2fa   : > { %v1856_v51 = vadd.f32 %v1808_v38, %v4044_v44 }
 0x2fb   : > { %v1744_v14 = vpop.trf.xlu0 }
 0x2fc   : > { %v1776_v25 = vpop.trf.xlu1  ;;  %v1824_v60 = vadd.f32 %v1744_v14, %v3184_v13  ;;  %2006 = vst [vmem:[%s3166_s7 + $0x438] sm:$0xff] %v1856_v51 }
 0x2fd   : > { %v1840_v47 = vadd.f32 %v1776_v25, %v3181_v12 }
 0x2fe   : > { %1878 = vst [vmem:[%s3166_s7 + $0x38] sm:$0xff] %v1824_v60 }
 0x2ff   : > { %1942 = vst [vmem:[%s3166_s7 + $0x238] sm:$0xff] %v1840_v47 }
 0x301   : > { %v1809_v63 = vpop.trf.xlu2 }
 0x302   : > { %v1857_v20 = vadd.f32 %v1809_v63, %v3203_v40 }
 0x303   : > { %v1745_v5 = vpop.trf.xlu0 }
 0x304   : > { %v1777_v35 = vpop.trf.xlu1  ;;  %v1825_v44 = vadd.f32 %v1745_v5, %v3213_v43  ;;  %2010 = vst [vmem:[%s3166_s7 + $0x458] sm:$0xff] %v1857_v20 }
 0x305   : > { %v1841_v27 = vadd.f32 %v1777_v35, %v3210_v42 }
 0x306   : > { %1882 = vst [vmem:[%s3166_s7 + $0x58] sm:$0xff] %v1825_v44 }
 0x307   : > { %1946 = vst [vmem:[%s3166_s7 + $0x258] sm:$0xff] %v1841_v27 }
 0x309   : > { %v1810_v12 = vpop.trf.xlu2 }
 0x30a   : > { %v1858_v13 = vadd.f32 %v1810_v12, %v3232_v54 }
 0x30b   : > { %v1746_v57 = vpop.trf.xlu0 }
 0x30c   : > { %v1778_v6 = vpop.trf.xlu1  ;;  %v1826_v40 = vadd.f32 %v1746_v57, %v3242_v58  ;;  %2014 = vst [vmem:[%s3166_s7 + $0x478] sm:$0xff] %v1858_v13 }
 0x30d   : > { %v1842_v33 = vadd.f32 %v1778_v6, %v3239_v19 }
 0x30e   : > { %1886 = vst [vmem:[%s3166_s7 + $0x78] sm:$0xff] %v1826_v40 }
 0x30f   : > { %1950 = vst [vmem:[%s3166_s7 + $0x278] sm:$0xff] %v1842_v33 }
 0x311   : > { %v1811_v42 = vpop.trf.xlu2 }
 0x312   : > { %v1859_v43 = vadd.f32 %v1811_v42, %v3261_v7 }
 0x313   : > { %v1747_v56 = vpop.trf.xlu0 }
 0x314   : > { %v1779_v26 = vpop.trf.xlu1  ;;  %v1827_v54 = vadd.f32 %v1747_v56, %v3271_v11  ;;  %2018 = vst [vmem:[%s3166_s7 + $0x498] sm:$0xff] %v1859_v43 }
 0x315   : > { %v1843_v15 = vadd.f32 %v1779_v26, %v3268_v9 }
 0x316   : > { %1890 = vst [vmem:[%s3166_s7 + $0x98] sm:$0xff] %v1827_v54 }
 0x317   : > { %1954 = vst [vmem:[%s3166_s7 + $0x298] sm:$0xff] %v1843_v15 }
 0x319   : > { %v1812_v19 = vpop.trf.xlu2 }
 0x31a   : > { %v1860_v58 = vadd.f32 %v1812_v19, %v3288_v39 }
 0x31b   : > { %v1748_v32 = vpop.trf.xlu0 }
 0x31c   : > { %v1780_v24 = vpop.trf.xlu1  ;;  %v1828_v7 = vadd.f32 %v1748_v32, %v3298_v46  ;;  %2022 = vst [vmem:[%s3166_s7 + $0x4b8] sm:$0xff] %v1860_v58 }
 0x31d   : > { %v1844_v38 = vadd.f32 %v1780_v24, %v3295_v45 }
 0x31e   : > { %1894 = vst [vmem:[%s3166_s7 + $0xb8] sm:$0xff] %v1828_v7 }
 0x31f   : > { %1958 = vst [vmem:[%s3166_s7 + $0x2b8] sm:$0xff] %v1844_v38 }
 0x321   : > { %v1813_v9 = vpop.trf.xlu2 }
 0x322   : > { %v1861_v11 = vadd.f32 %v1813_v9, %v3315_v55 }
 0x323   : > { %v1749_v51 = vpop.trf.xlu0 }
 0x324   : > { %v1781_v14 = vpop.trf.xlu1  ;;  %v1829_v39 = vadd.f32 %v1749_v51, %v3325_v2  ;;  %2026 = vst [vmem:[%s3166_s7 + $0x4d8] sm:$0xff] %v1861_v11 }
 0x325   : > { %v1845_v25 = vadd.f32 %v1781_v14, %v3322_v1 }
 0x326   : > { %1898 = vst [vmem:[%s3166_s7 + $0xd8] sm:$0xff] %v1829_v39 }
 0x327   : > { %1962 = vst [vmem:[%s3166_s7 + $0x2d8] sm:$0xff] %v1845_v25 }
 0x329   : > { %v1814_v45 = vpop.trf.xlu2 }
 0x32a   : > { %v1862_v46 = vadd.f32 %v1814_v45, %v3342_v29 }
 0x32b   : > { %v1750_v60 = vpop.trf.xlu0 }
 0x32c   : > { %v1782_v47 = vpop.trf.xlu1  ;;  %v1830_v55 = vadd.f32 %v1750_v60, %v3352_v37  ;;  %2030 = vst [vmem:[%s3166_s7 + $0x4f8] sm:$0xff] %v1862_v46 }
 0x32d   : > { %v1846_v63 = vadd.f32 %v1782_v47, %v3349_v34 }
 0x32e   : > { %1902 = vst [vmem:[%s3166_s7 + $0xf8] sm:$0xff] %v1830_v55 }
 0x32f   : > { %1966 = vst [vmem:[%s3166_s7 + $0x2f8] sm:$0xff] %v1846_v63 }
 0x331   : > { %v1815_v1 = vpop.trf.xlu2 }
 0x332   : > { %v1863_v2 = vadd.f32 %v1815_v1, %v3369_v53 }
 0x333   : > { %v1751_v20 = vpop.trf.xlu0 }
 0x334   : > { %v1783_v5 = vpop.trf.xlu1  ;;  %v1831_v29 = vadd.f32 %v1751_v20, %v3381_v61  ;;  %2034 = vst [vmem:[%s3166_s7 + $0x518] sm:$0xff] %v1863_v2 }
 0x335   : > { %v1847_v35 = vadd.f32 %v1783_v5, %v3378_v59 }
 0x336   : > { %1906 = vst [vmem:[%s3166_s7 + $0x118] sm:$0xff] %v1831_v29 }
 0x337   : > { %1970 = vst [vmem:[%s3166_s7 + $0x318] sm:$0xff] %v1847_v35 }
 0x339   : > { %v1816_v34 = vpop.trf.xlu2 }
 0x33a   : > { %v1864_v37 = vadd.f32 %v1816_v34, %v3400_v16 }
 0x33b   : > { %v1752_v44 = vpop.trf.xlu0 }
 0x33c   : > { %v1784_v27 = vpop.trf.xlu1  ;;  %v1832_v53 = vadd.f32 %v1752_v44, %v3412_v30  ;;  %2038 = vst [vmem:[%s3166_s7 + $0x538] sm:$0xff] %v1864_v37 }
 0x33d   : > { %v1848_v12 = vadd.f32 %v1784_v27, %v3409_v17 }
 0x33e   : > { %1910 = vst [vmem:[%s3166_s7 + $0x138] sm:$0xff] %v1832_v53 }
 0x33f   : > { %1974 = vst [vmem:[%s3166_s7 + $0x338] sm:$0xff] %v1848_v12 }
 0x341   : > { %v1817_v59 = vpop.trf.xlu2 }
 0x342   : > { %v1865_v61 = vadd.f32 %v1817_v59, %v3433_v52 }
 0x343   : > { %v1753_v13 = vpop.trf.xlu0 }
 0x344   : > { %v1785_v57 = vpop.trf.xlu1  ;;  %v1833_v16 = vadd.f32 %v1753_v13, %v3445_v22  ;;  %2042 = vst [vmem:[%s3166_s7 + $0x558] sm:$0xff] %v1865_v61 }
 0x345   : > { %v1849_v6 = vadd.f32 %v1785_v57, %v3442_v3 }
 0x346   : > { %1914 = vst [vmem:[%s3166_s7 + $0x158] sm:$0xff] %v1833_v16 }
 0x347   : > { %1978 = vst [vmem:[%s3166_s7 + $0x358] sm:$0xff] %v1849_v6 }
 0x349   : > { %v1818_v17 = vpop.trf.xlu2 }
 0x34a   : > { %v1866_v30 = vadd.f32 %v1818_v17, %v3466_v23 }
 0x34b   : > { %v1754_v40 = vpop.trf.xlu0 }
 0x34c   : > { %v1786_v33 = vpop.trf.xlu1  ;;  %v1834_v52 = vadd.f32 %v1754_v40, %v3478_v48  ;;  %2046 = vst [vmem:[%s3166_s7 + $0x578] sm:$0xff] %v1866_v30 }
 0x34d   : > { %v1850_v42 = vadd.f32 %v1786_v33, %v3475_v21 }
 0x34e   : > { %1918 = vst [vmem:[%s3166_s7 + $0x178] sm:$0xff] %v1834_v52 }
 0x34f   : > { %1982 = vst [vmem:[%s3166_s7 + $0x378] sm:$0xff] %v1850_v42 }
 0x351   : > { %v1819_v3 = vpop.trf.xlu2 }
 0x352   : > { %v1867_v22 = vadd.f32 %v1819_v3, %v4036_v4 }
 0x353   : > { %v1755_v43 = vpop.trf.xlu0 }
 0x354   : > { %v1787_v56 = vpop.trf.xlu1  ;;  %v1835_v23 = vadd.f32 %v1755_v43, %v4045_v36  ;;  %2050 = vst [vmem:[%s3166_s7 + $0x598] sm:$0xff] %v1867_v22 }
 0x355   : > { %v1851_v26 = vadd.f32 %v1787_v56, %v4046_v28 }
 0x356   : > { %1922 = vst [vmem:[%s3166_s7 + $0x198] sm:$0xff] %v1835_v23 }
 0x357   : > { %1986 = vst [vmem:[%s3166_s7 + $0x398] sm:$0xff] %v1851_v26 }
 0x359   : > { %v1820_v21 = vpop.trf.xlu2 }
 0x35a   : > { %v1868_v48 = vadd.f32 %v1820_v21, %v4047_v41 }
 0x35b   : > { %v1756_v54 = vpop.trf.xlu0 }
 0x35c   : > { %v1788_v15 = vpop.trf.xlu1  ;;  %v1836_v4 = vadd.f32 %v1756_v54, %v4040_v10  ;;  %2054 = vst [vmem:[%s3166_s7 + $0x5b8] sm:$0xff] %v1868_v48 }
 0x35d   : > { %v1852_v19 = vadd.f32 %v1788_v15, %v4041_v18 }
 0x35e   : > { %1926 = vst [vmem:[%s3166_s7 + $0x1b8] sm:$0xff] %v1836_v4 }
 0x35f   : > { %1990 = vst [vmem:[%s3166_s7 + $0x3b8] sm:$0xff] %v1852_v19 }
 0x361   : > { %v1821_v36 = vpop.trf.xlu2 }
 0x362   : > { %v1869_v28 = vadd.f32 %v1821_v36, %v4042_v62 }
 0x363   : > { %v1757_v58 = vpop.trf.xlu0 }
 0x364   : > { %v1789_v32 = vpop.trf.xlu1  ;;  %v1837_v41 = vadd.f32 %v1757_v58, %v3587_v50  ;;  %2058 = vst [vmem:[%s3166_s7 + $0x5d8] sm:$0xff] %v1869_v28 }
 0x365   : > { %v1853_v24 = vadd.f32 %v1789_v32, %v3584_v49 }
 0x366   : > { %1930 = vst [vmem:[%s3166_s7 + $0x1d8] sm:$0xff] %v1837_v41 }
 0x367   : > { %1994 = vst [vmem:[%s3166_s7 + $0x3d8] sm:$0xff] %v1853_v24 }
 0x369   : > { %v1822_v10 = vpop.trf.xlu2 }
 0x36a   : > { %v1870_v18 = vadd.f32 %v1822_v10, %v3609_v8 }
 0x36b   : > { %v1758_v62 = vpop.trf.xlu0 }
 0x36c   : > { %v1790_v50 = vpop.trf.xlu1  ;;  %v1838_v49 = vadd.f32 %v1758_v62, %v3622_v0  ;;  %2062 = vst [vmem:[%s3166_s7 + $0x5f8] sm:$0xff] %v1870_v18 }
 0x36d   : > { %v1854_v7 = vadd.f32 %v1790_v50, %v4043_v31 }
 0x36e   : > { %1934 = vst [vmem:[%s3166_s7 + $0x1f8] sm:$0xff] %v1838_v49 }
 0x36f   : > { %1998 = vst [vmem:[%s3166_s7 + $0x3f8] sm:$0xff] %v1854_v7 }
 0x370   : > { %2574 = shalt.err (!%p2571_p8)
}
 0x371   : > { %s2622_s30 = smov 512   ;;  %s2623_s7 = smov 32  }
 0x372   : > { %2424 = dma.vmem_to_hbm [thread:$0]  (%p2701_p11), %s2078_s6, 24576, %s2080_s19, %s2064_s8, %s2622_s30, %s2622_s30, %s2623_s7  }
 0x373 PF: > { %s2094_s14 = sand.u32 1, %s2605_s15   ;;  %p2431_p9 = pnand %p2186_p2, %p2705_p12 }
 0x374   : > { %s2095_s20 = scalar_lea.sflag [#allocation5], %s2094_s14 }
 0x375   : > { %p2432_p10 = pneg %p2431_p9 }
 0x377   : > { %2600 = dma.done.wait (%p2432_p10), %s2095_s20, 24576  }
 0x378   : > { %2602 = vsyncadd (%p2432_p10), %s2095_s20, 4294942720  ;;  %p18_p1 = scmp.ge.s32.totalorder %s2674_s21, 4   ;;  %s4048_s15 = smov %s2609_s16 }
 0x379   : > { %s4049_s16 = smov %s2613_s17  ;;  %s4050_s17 = smov %s2686_s24 }
 0x37a   : > { %s4051_s18 = smov %s2674_s21  ;;  %20 = sbr.rel (!%p18_p1) target bundleno = 9 (0x9), region = 120 }
 0x37f   :  { %2101 = vsyncpa [#allocation4], 1 }
 0x380   :  { %2103 = vsyncpa [#allocation4 + $0x1], 1 }
 0x381   :  { %2104 = vsyncpa [#allocation7], 1 }
 0x382   :  { %2106 = vsyncpa [#allocation7 + $0x1], 1 }
 0x383   :  { %2107 = vsyncpa [#allocation5], 1 }
 0x384   :  { %2109 = vsyncpa [#allocation5 + $0x1], 1 }

</bundles_post_ra>
